<compile_context>
chip_gen: v7x
topology: tpu7x:2x2x1
jax: 0.10.0
libtpu: 0.0.40
codegen_flags: <defaults>
</compile_context>

<pallas_src>
import math
import functools

import jax
import jax.numpy as jnp
from jax.experimental import pallas as pl
from jax.experimental.pallas import tpu as pltpu

NEG_INF = -1e30
LN_EPS = 1e-5
VMEM_LIMIT = 48 * 1024 * 1024


# ----------------------------------------------------------------------------
# tiling helpers (all static Python ints, resolved at trace time)
# ----------------------------------------------------------------------------
def _weight_tile_target():
    """Lane-dim weight-tile target: 256 on v7x (64 MiB VMEM), 512 on v5e/v6e."""
    try:
        kind = jax.devices()[0].device_kind.lower()
        if "v7" in kind:
            return 256
    except Exception:
        pass
    return 512


def _pad_lane_dim(dim, target):
    """Padded size so a multiple-of-128 lane tile divides it exactly."""
    if dim <= target:
        return dim
    tile = (target // 128) * 128
    return ((dim + tile - 1) // tile) * tile


def _lane_tile(padded_dim, target):
    """Tile used along a (pre-padded) lane dim."""
    return padded_dim if padded_dim <= target else (target // 128) * 128


def _row_tile(rows, target=256):
    """Row (sublane) tile: multiple of 8, capped at `target`."""
    if rows <= target:
        return ((rows + 7) // 8) * 8
    return target


def _batch_block(batch, seq, embed, cap=8, max_bytes=2 * 1024 * 1024):
    """Largest divisor of batch (<= cap) whose f32 (TB,S,E) block stays small."""
    per = seq * embed * 4
    tb = 1
    for c in range(1, min(batch, cap) + 1):
        if batch % c == 0 and c * per <= max_bytes:
            tb = c
    return tb


def _head_block(nhead, dh, target=256):
    """Smallest divisor HB of nhead with HB*dh >= target and HB*dh % 128 == 0
    (so the weight block shape is legal); falls back to all heads."""
    for hb in range(1, nhead + 1):
        if nhead % hb:
            continue
        w = hb * dh
        if w >= target and (w % 128 == 0 or hb == nhead):
            return hb
    return nhead


# ----------------------------------------------------------------------------
# Pallas kernels
# ----------------------------------------------------------------------------
def attn_block_kernel(x_ref, bias_ref,
                      wq_ref, wk_ref, wv_ref,
                      bq_ref, bk_ref, bv_ref,
                      wo_ref, bo_ref, ln1w_ref, ln1b_ref,
                      out_ref, acc_ref, xb_ref, *, heads_per_block, dh):
    """Self-attention + residual + LayerNorm1 for one (batch-block, head-block).

    grid = (B//TB, nhead//HB); the head-block axis is "arbitrary": the output
    projection is accumulated over head blocks into acc_ref (f32), residual+LN
    applied on the last block.

    x_ref   : (TB, S, E) f32      bias_ref: (TB, 1, S) f32 additive pad bias
    wq/k/v  : (E, HB*dh) bf16     bq/k/v  : (1, HB*dh) f32  (1/sqrt(dh) folded into q)
    wo_ref  : (HB*dh, E) bf16     bo/ln1  : (1, E) f32
    out_ref : (TB, S, E) f32      acc_ref : (TB, S, E) f32  xb_ref: (TB*S, E) bf16
    """
    hb = pl.program_id(1)
    TB, S, E = x_ref.shape
    HBD = heads_per_block * dh

    @pl.when(hb == 0)
    def _():
        acc_ref[...] = jnp.zeros_like(acc_ref)
        # hoist the f32->bf16 cast of x out of the head-block reduction loop
        xb_ref[...] = x_ref[...].reshape(TB * S, E).astype(jnp.bfloat16)

    xb = xb_ref[...]                                               # (TB*S, E) bf16

    # wide projections: N = HB*dh (>= 256 when possible) on the MXU
    q = (jnp.dot(xb, wq_ref[...], preferred_element_type=jnp.float32)
         + bq_ref[...]).astype(jnp.bfloat16).reshape(TB, S, HBD)
    k = (jnp.dot(xb, wk_ref[...], preferred_element_type=jnp.float32)
         + bk_ref[...]).astype(jnp.bfloat16).reshape(TB, S, HBD)
    v = (jnp.dot(xb, wv_ref[...], preferred_element_type=jnp.float32)
         + bv_ref[...]).astype(jnp.bfloat16).reshape(TB, S, HBD)

    # causal mask built in-kernel; key-padding arrives as an additive bias row
    row = jax.lax.broadcasted_iota(jnp.int32, (S, S), 0)
    col = jax.lax.broadcasted_iota(jnp.int32, (S, S), 1)
    causal = (row >= col)[None]                                    # (1, S, S)
    bias = bias_ref[...]                                           # (TB, 1, S)

    # per-head scores / softmax / ctx (the dh contraction is inherent to attention)
    ctx_parts = []
    for h in range(heads_per_block):
        lo, hi = h * dh, (h + 1) * dh
        qh, kh, vh = q[:, :, lo:hi], k[:, :, lo:hi], v[:, :, lo:hi]   # (TB,S,dh) bf16
        s = jnp.einsum('bqd,bkd->bqk', qh, kh,
                       preferred_element_type=jnp.float32)            # (TB,S,S) f32
        s = jnp.where(causal, s + bias, NEG_INF)
        m = jnp.max(s, axis=-1, keepdims=True)
        p = jnp.exp(s - m)
        p = p * pl.reciprocal(jnp.sum(p, axis=-1, keepdims=True), approx=False)
        ctx_parts.append(jnp.einsum('bqk,bkd->bqd', p.astype(jnp.bfloat16), vh,
                                    preferred_element_type=jnp.float32))
    ctx = ctx_parts[0] if heads_per_block == 1 else jnp.concatenate(ctx_parts, axis=-1)

    # wide output projection for this head block (K = HB*dh), accumulated over blocks
    ctx2 = ctx.reshape(TB * S, HBD).astype(jnp.bfloat16)
    acc_ref[...] += jnp.dot(ctx2, wo_ref[...],
                            preferred_element_type=jnp.float32).reshape(TB, S, E)

    @pl.when(hb == pl.num_programs(1) - 1)
    def _():
        h1 = x_ref[...] + acc_ref[...] + bo_ref[...]
        mu = jnp.mean(h1, axis=-1, keepdims=True)
        var = jnp.mean((h1 - mu) ** 2, axis=-1, keepdims=True)
        out_ref[...] = ((h1 - mu) * jax.lax.rsqrt(var + LN_EPS)
                        * ln1w_ref[...] + ln1b_ref[...])


def ffn_block_kernel(x_ref, w1_ref, b1_ref, w2_ref, b2_ref,
                     ln2w_ref, ln2b_ref, out_ref, acc_ref, xb_ref):
    """Feed-forward (Linear -> ReLU -> Linear) + residual + LayerNorm2 on flattened rows.

    grid = (rows//TR, H//TH); the H-tile axis is "arbitrary" and accumulated in f32.
    x_ref: (TR,E) f32  w1: (E,TH) bf16  b1: (1,TH) f32  w2: (TH,E) bf16
    b2/ln2: (1,E) f32  out: (TR,E) f32  acc: (TR,E) f32  xb: (TR,E) bf16
    """
    t = pl.program_id(1)

    @pl.when(t == 0)
    def _():
        acc_ref[...] = jnp.zeros_like(acc_ref)
        xb_ref[...] = x_ref[...].astype(jnp.bfloat16)

    f = jnp.dot(xb_ref[...], w1_ref[...], preferred_element_type=jnp.float32) + b1_ref[...]
    f = jnp.maximum(f, 0.0)
    acc_ref[...] += jnp.dot(f.astype(jnp.bfloat16), w2_ref[...],
                            preferred_element_type=jnp.float32)

    @pl.when(t == pl.num_programs(1) - 1)
    def _():
        h2 = x_ref[...] + acc_ref[...] + b2_ref[...]
        mu = jnp.mean(h2, axis=-1, keepdims=True)
        var = jnp.mean((h2 - mu) ** 2, axis=-1, keepdims=True)
        out_ref[...] = ((h2 - mu) * jax.lax.rsqrt(var + LN_EPS)
                        * ln2w_ref[...] + ln2b_ref[...])


def fc_out_kernel(x_ref, w_ref, b_ref, out_ref):
    """Vocab projection tile on flattened rows: (TR,E) @ (E,TV) + (1,TV) -> (TR,TV)."""
    xb = x_ref[...].astype(jnp.bfloat16)
    out_ref[...] = jnp.dot(xb, w_ref[...], preferred_element_type=jnp.float32) + b_ref[...]


# ----------------------------------------------------------------------------
# Pallas wrappers
# ----------------------------------------------------------------------------
def attention_block(x, pad_bias, lp, *, nhead):
    B, S, E = x.shape
    dh = E // nhead
    HB = _head_block(nhead, dh, target=256)
    n_hb = nhead // HB
    HBD = HB * dh
    TB = _batch_block(B, S, E)

    kern = functools.partial(attn_block_kernel, heads_per_block=HB, dh=dh)
    return pl.pallas_call(
        kern,
        out_shape=jax.ShapeDtypeStruct((B, S, E), jnp.float32),
        grid=(B // TB, n_hb),
        in_specs=[
            pl.BlockSpec((TB, S, E), lambda b, h: (b, 0, 0)),   # x
            pl.BlockSpec((TB, 1, S), lambda b, h: (b, 0, 0)),   # additive pad bias
            pl.BlockSpec((E, HBD), lambda b, h: (0, h)),        # wq (scale folded)
            pl.BlockSpec((E, HBD), lambda b, h: (0, h)),        # wk
            pl.BlockSpec((E, HBD), lambda b, h: (0, h)),        # wv
            pl.BlockSpec((1, HBD), lambda b, h: (0, h)),        # bq (scale folded)
            pl.BlockSpec((1, HBD), lambda b, h: (0, h)),        # bk
            pl.BlockSpec((1, HBD), lambda b, h: (0, h)),        # bv
            pl.BlockSpec((HBD, E), lambda b, h: (h, 0)),        # wo
            pl.BlockSpec((1, E), lambda b, h: (0, 0)),          # bo
            pl.BlockSpec((1, E), lambda b, h: (0, 0)),          # ln1_w
            pl.BlockSpec((1, E), lambda b, h: (0, 0)),          # ln1_b
        ],
        out_specs=pl.BlockSpec((TB, S, E), lambda b, h: (b, 0, 0)),
        scratch_shapes=[pltpu.VMEM((TB, S, E), jnp.float32),
                        pltpu.VMEM((TB * S, E), jnp.bfloat16)],
        compiler_params=pltpu.CompilerParams(
            dimension_semantics=("parallel", "arbitrary"),
            vmem_limit_bytes=VMEM_LIMIT),
    )(x, pad_bias, lp["wq"], lp["wk"], lp["wv"], lp["bq"], lp["bk"], lp["bv"],
      lp["wo"], lp["bo"], lp["ln1_w"], lp["ln1_b"])


def ffn_block(x, lp):
    B, S, E = x.shape
    rows = B * S
    x2 = x.reshape(rows, E)
    TR = _row_tile(rows)
    rows_pad = ((rows + TR - 1) // TR) * TR
    if rows_pad != rows:
        x2 = jnp.pad(x2, ((0, rows_pad - rows), (0, 0)))

    H_pad = lp["w1t"].shape[1]
    TH = _lane_tile(H_pad, _weight_tile_target())

    out2 = pl.pallas_call(
        ffn_block_kernel,
        out_shape=jax.ShapeDtypeStruct((rows_pad, E), jnp.float32),
        grid=(rows_pad // TR, H_pad // TH),
        in_specs=[
            pl.BlockSpec((TR, E), lambda r, t: (r, 0)),         # x rows
            pl.BlockSpec((E, TH), lambda r, t: (0, t)),         # W1^T tile
            pl.BlockSpec((1, TH), lambda r, t: (0, t)),         # b1 tile
            pl.BlockSpec((TH, E), lambda r, t: (t, 0)),         # W2^T tile
            pl.BlockSpec((1, E), lambda r, t: (0, 0)),          # b2
            pl.BlockSpec((1, E), lambda r, t: (0, 0)),          # ln2_w
            pl.BlockSpec((1, E), lambda r, t: (0, 0)),          # ln2_b
        ],
        out_specs=pl.BlockSpec((TR, E), lambda r, t: (r, 0)),
        scratch_shapes=[pltpu.VMEM((TR, E), jnp.float32),
                        pltpu.VMEM((TR, E), jnp.bfloat16)],
        compiler_params=pltpu.CompilerParams(
            dimension_semantics=("parallel", "arbitrary"),
            vmem_limit_bytes=VMEM_LIMIT),
    )(x2, lp["w1t"], lp["b1"], lp["w2t"], lp["b2"], lp["ln2_w"], lp["ln2_b"])
    return out2[:rows].reshape(B, S, E)


def fc_out(x, w, b, *, vocab_size):
    B, S, E = x.shape
    rows = B * S
    x2 = x.reshape(rows, E)
    TR = _row_tile(rows, target=512)
    rows_pad = ((rows + TR - 1) // TR) * TR
    if rows_pad != rows:
        x2 = jnp.pad(x2, ((0, rows_pad - rows), (0, 0)))

    V_pad = w.shape[1]
    TV = _lane_tile(V_pad, _weight_tile_target())

    out2 = pl.pallas_call(
        fc_out_kernel,
        out_shape=jax.ShapeDtypeStruct((rows_pad, V_pad), jnp.float32),
        grid=(rows_pad // TR, V_pad // TV),
        in_specs=[
            pl.BlockSpec((TR, E), lambda r, v: (r, 0)),
            pl.BlockSpec((E, TV), lambda r, v: (0, v)),
            pl.BlockSpec((1, TV), lambda r, v: (0, v)),
        ],
        out_specs=pl.BlockSpec((TR, TV), lambda r, v: (r, v)),
        compiler_params=pltpu.CompilerParams(
            dimension_semantics=("parallel", "parallel"),
            vmem_limit_bytes=VMEM_LIMIT),
    )(x2, w, b)
    return out2[:rows, :vocab_size].reshape(B, S, vocab_size)


# ----------------------------------------------------------------------------
# Parameters: PyTorch convention -> kernel layout (pre-transposed / padded, bf16)
# ----------------------------------------------------------------------------
def sinusoidal_pe(max_len, d_model):
    position = jnp.arange(max_len, dtype=jnp.float32)[:, None]
    div_term = jnp.exp(jnp.arange(0, d_model, 2, dtype=jnp.float32)
                       * (-math.log(10000.0) / d_model))
    pe = jnp.zeros((max_len, d_model), dtype=jnp.float32)
    pe = pe.at[:, 0::2].set(jnp.sin(position * div_term))
    pe = pe.at[:, 1::2].set(jnp.cos(position * div_term))
    return pe


def _prep_layer(raw, nhead):
    """Convert a PyTorch-convention encoder layer to the kernel layout (done once)."""
    E = raw["out_proj_w"].shape[0]
    dh = E // nhead
    scale = 1.0 / math.sqrt(dh)
    wq, wk, wv = jnp.split(raw["in_proj_w"], 3, axis=0)      # each (E_out, E_in)
    bq, bk, bv = jnp.split(raw["in_proj_b"], 3)

    # FFN weights, hidden dim zero-padded to a tile multiple (exact: padded units
    # have zero bias -> relu(0)=0 -> contribute nothing through zero W2 rows).
    H = raw["lin1_w"].shape[0]
    H_pad = _pad_lane_dim(H, _weight_tile_target())
    w1t = raw["lin1_w"].T                                    # (E, H)
    b1 = raw["lin1_b"].reshape(1, H)
    w2t = raw["lin2_w"].T                                    # (H, E)
    if H_pad != H:
        w1t = jnp.pad(w1t, ((0, 0), (0, H_pad - H)))
        b1 = jnp.pad(b1, ((0, 0), (0, H_pad - H)))
        w2t = jnp.pad(w2t, ((0, H_pad - H), (0, 0)))

    return {
        # 1/sqrt(dh) folded into the Q projection (removes S^2 VPU muls per head)
        "wq": (wq.T * scale).astype(jnp.bfloat16),           # (E, E)
        "wk": wk.T.astype(jnp.bfloat16),
        "wv": wv.T.astype(jnp.bfloat16),
        "bq": (bq * scale).reshape(1, E).astype(jnp.float32),
        "bk": bk.reshape(1, E).astype(jnp.float32),
        "bv": bv.reshape(1, E).astype(jnp.float32),
        # concat(ctx_h) @ Wo.T == sum over head blocks of ctx_block @ Wo.T rows
        "wo": raw["out_proj_w"].T.astype(jnp.bfloat16),      # (E, E)
        "bo": raw["out_proj_b"].reshape(1, E).astype(jnp.float32),
        "ln1_w": raw["ln1_w"].reshape(1, E).astype(jnp.float32),
        "ln1_b": raw["ln1_b"].reshape(1, E).astype(jnp.float32),
        "w1t": w1t.astype(jnp.bfloat16),                     # (E, H_pad)
        "b1": b1.astype(jnp.float32),
        "w2t": w2t.astype(jnp.bfloat16),                     # (H_pad, E)
        "b2": raw["lin2_b"].reshape(1, E).astype(jnp.float32),
        "ln2_w": raw["ln2_w"].reshape(1, E).astype(jnp.float32),
        "ln2_b": raw["ln2_b"].reshape(1, E).astype(jnp.float32),
    }


def init_params(key, vocab_size, embed_size, hidden_size, num_layers, nhead, max_len=5000):
    E, H, V = embed_size, hidden_size, vocab_size
    V_pad = _pad_lane_dim(V, _weight_tile_target())

    def nrm(k, shape, std=0.02):
        return std * jax.random.normal(k, shape, dtype=jnp.float32)

    keys = jax.random.split(key, 2 + 4 * num_layers)

    fc_w = nrm(keys[1], (V, E)).T                            # (E, V)
    fc_b = jnp.zeros((1, V), jnp.float32)
    if V_pad != V:
        fc_w = jnp.pad(fc_w, ((0, 0), (0, V_pad - V)))
        fc_b = jnp.pad(fc_b, ((0, 0), (0, V_pad - V)))

    params = {
        "embedding": nrm(keys[0], (V, E), std=1.0),
        "pe": sinusoidal_pe(max_len, E),
        "fc_w": fc_w.astype(jnp.bfloat16),                   # (E, V_pad) bf16
        "fc_b": fc_b,                                        # (1, V_pad) f32
        "layers": [],
    }
    for l in range(num_layers):
        k = keys[2 + 4 * l: 2 + 4 * (l + 1)]
        raw = {
            "in_proj_w": nrm(k[0], (3 * E, E)),
            "in_proj_b": jnp.zeros((3 * E,), jnp.float32),
            "out_proj_w": nrm(k[1], (E, E)),
            "out_proj_b": jnp.zeros((E,), jnp.float32),
            "ln1_w": jnp.ones((E,), jnp.float32), "ln1_b": jnp.zeros((E,), jnp.float32),
            "lin1_w": nrm(k[2], (H, E)), "lin1_b": jnp.zeros((H,), jnp.float32),
            "lin2_w": nrm(k[3], (E, H)), "lin2_b": jnp.zeros((E,), jnp.float32),
            "ln2_w": jnp.ones((E,), jnp.float32), "ln2_b": jnp.zeros((E,), jnp.float32),
        }
        params["layers"].append(_prep_layer(raw, nhead))
    return params


# ----------------------------------------------------------------------------
# Forward pass
# ----------------------------------------------------------------------------
def decoder_only_transformer_forward(params, token_ids, attention_mask, *, nhead, vocab_size):
    """token_ids: (B, S) int32; attention_mask: (B, S) {0,1} or None.
    Returns logits (B, S, vocab) float32."""
    B, S = token_ids.shape
    # Embedding + sinusoidal positional encoding (dropout = identity in eval).
    emb = jnp.take(params["embedding"], token_ids, axis=0)
    emb = (emb + params["pe"][:S][None]).astype(jnp.float32)

    # Key padding as an additive bias row (0 keep / NEG_INF mask); causal in-kernel.
    if attention_mask is None:
        pad_bias = jnp.zeros((B, 1, S), jnp.float32)
    else:
        pad_bias = jnp.where(attention_mask.reshape(B, 1, S) > 0,
                             0.0, NEG_INF).astype(jnp.float32)

    h = emb
    for lp in params["layers"]:
        h = attention_block(h, pad_bias, lp, nhead=nhead)
        h = ffn_block(h, lp)
    return fc_out(h, params["fc_w"], params["fc_b"], vocab_size=vocab_size)


# ----------------------------------------------------------------------------
# Demo
# ----------------------------------------------------------------------------
if __name__ == "__main__":
    vocab_size = 64
    embed_size = 32
    hidden_size = 64
    num_layers = 2
    nhead = 4
    batch, seq_len = 2, 8

    root = jax.random.PRNGKey(0)
    k_tok, k_par = jax.random.split(root)

    token_ids = jax.random.randint(k_tok, (batch, seq_len), 0, vocab_size, dtype=jnp.int32)
    attention_mask = jnp.ones((batch, seq_len), dtype=jnp.int32)

    params = init_params(k_par, vocab_size, embed_size, hidden_size, num_layers, nhead)

    fwd = jax.jit(functools.partial(decoder_only_transformer_forward,
                                    nhead=nhead, vocab_size=vocab_size))
    logits = fwd(params, token_ids, attention_mask)
    logits = jax.block_until_ready(logits)

    assert logits.shape == (batch, seq_len, vocab_size)
    assert bool(jnp.all(jnp.isfinite(logits)))
    print("KERNEL_OK")
</pallas_src>

<mosaic_0001>
module attributes {stable_mosaic.version = 11 : i64} {
  func.func @attn_block_kernel(%arg0: i32, %arg1: i32, %arg2: memref<2x8x32xf32, #tpu.memory_space<vmem>>, %arg3: memref<2x1x8xf32, #tpu.memory_space<vmem>>, %arg4: memref<32x32xbf16, #tpu.memory_space<vmem>>, %arg5: memref<32x32xbf16, #tpu.memory_space<vmem>>, %arg6: memref<32x32xbf16, #tpu.memory_space<vmem>>, %arg7: memref<1x32xf32, #tpu.memory_space<vmem>>, %arg8: memref<1x32xf32, #tpu.memory_space<vmem>>, %arg9: memref<1x32xf32, #tpu.memory_space<vmem>>, %arg10: memref<32x32xbf16, #tpu.memory_space<vmem>>, %arg11: memref<1x32xf32, #tpu.memory_space<vmem>>, %arg12: memref<1x32xf32, #tpu.memory_space<vmem>>, %arg13: memref<1x32xf32, #tpu.memory_space<vmem>>, %arg14: memref<2x8x32xf32, #tpu.memory_space<vmem>>, %arg15: memref<2x8x32xf32, #tpu.memory_space<vmem>>, %arg16: memref<16x32xbf16, #tpu.memory_space<vmem>>) attributes {dimension_semantics = [#tpu.dimension_semantics<parallel>, #tpu.dimension_semantics<arbitrary>], iteration_bounds = array<i64: 1, 1>, scalar_prefetch = 0 : i64, scratch_operands = 2 : i64, tpu.core_type = #tpu.core_type<tc>, window_params = [{transform_indices = @transform_0, window_bounds = array<i64: 2, 8, 32>}, {transform_indices = @transform_1, window_bounds = array<i64: 2, 1, 8>}, {transform_indices = @transform_2, window_bounds = array<i64: 32, 32>}, {transform_indices = @transform_3, window_bounds = array<i64: 32, 32>}, {transform_indices = @transform_4, window_bounds = array<i64: 32, 32>}, {transform_indices = @transform_5, window_bounds = array<i64: 1, 32>}, {transform_indices = @transform_6, window_bounds = array<i64: 1, 32>}, {transform_indices = @transform_7, window_bounds = array<i64: 1, 32>}, {transform_indices = @transform_8, window_bounds = array<i64: 32, 32>}, {pipeline_mode = #tpu.pipeline_mode<synchronous>, transform_indices = @transform_9, window_bounds = array<i64: 1, 32>}, {pipeline_mode = #tpu.pipeline_mode<synchronous>, transform_indices = @transform_10, window_bounds = array<i64: 1, 32>}, {pipeline_mode = #tpu.pipeline_mode<synchronous>, transform_indices = @transform_11, window_bounds = array<i64: 1, 32>}, {transform_indices = @transform_12, window_bounds = array<i64: 2, 8, 32>}]} {
    %c0_i32 = arith.constant 0 : i32
    %0 = arith.cmpi eq, %arg1, %c0_i32 : i32
    %1 = arith.extui %0 : i1 to i32
    %c0_i32_0 = arith.constant 0 : i32
    %2 = arith.cmpi ne, %1, %c0_i32_0 : i32
    scf.if %2 {
      %cst_50 = arith.constant 0.000000e+00 : f32
      %130 = vector.broadcast %cst_50 : f32 to vector<2x8x32xf32>
      %c0_51 = arith.constant 0 : index
      %c0_52 = arith.constant 0 : index
      %c0_53 = arith.constant 0 : index
      %131 = vector.load %arg15[%c0_51, %c0_52, %c0_53] : memref<2x8x32xf32, #tpu.memory_space<vmem>>, vector<2x8x32xf32>
      tpu.vector_store %arg15[%c0_51, %c0_52, %c0_53], %130 {strides = array<i32>} : memref<2x8x32xf32, #tpu.memory_space<vmem>>, vector<2x8x32xf32>,
      %c0_54 = arith.constant 0 : index
      %c0_55 = arith.constant 0 : index
      %c0_56 = arith.constant 0 : index
      %132 = vector.load %arg2[%c0_54, %c0_55, %c0_56] : memref<2x8x32xf32, #tpu.memory_space<vmem>>, vector<2x8x32xf32>
      %133 = vector.shape_cast %132 : vector<2x8x32xf32> to vector<16x32xf32>
      %134 = arith.truncf %133 : vector<16x32xf32> to vector<16x32xbf16>
      %c0_57 = arith.constant 0 : index
      %c0_58 = arith.constant 0 : index
      %135 = vector.load %arg16[%c0_57, %c0_58] : memref<16x32xbf16, #tpu.memory_space<vmem>>, vector<16x32xbf16>
      tpu.vector_store %arg16[%c0_57, %c0_58], %134 {strides = array<i32>} : memref<16x32xbf16, #tpu.memory_space<vmem>>, vector<16x32xbf16>,
    } else {
    }
    %c0 = arith.constant 0 : index
    %c0_1 = arith.constant 0 : index
    %3 = vector.load %arg16[%c0, %c0_1] : memref<16x32xbf16, #tpu.memory_space<vmem>>, vector<16x32xbf16>
    %c0_2 = arith.constant 0 : index
    %c0_3 = arith.constant 0 : index
    %4 = vector.load %arg4[%c0_2, %c0_3] : memref<32x32xbf16, #tpu.memory_space<vmem>>, vector<32x32xbf16>
    %cst = arith.constant dense<0.000000e+00> : vector<16x32xf32>
    %5 = tpu.matmul %3, %4, %cst {dimension_numbers = #tpu.dot_dimension_numbers<[1], [0], [0], [1], [0, 0, 1, 1], [], []>} : vector<16x32xbf16>, vector<32x32xbf16>, vector<16x32xf32> -> vector<16x32xf32>
    %c0_4 = arith.constant 0 : index
    %c0_5 = arith.constant 0 : index
    %6 = vector.load %arg7[%c0_4, %c0_5] : memref<1x32xf32, #tpu.memory_space<vmem>>, vector<1x32xf32>
    %7 = vector.broadcast %6 : vector<1x32xf32> to vector<16x32xf32>
    %8 = arith.addf %5, %7 : vector<16x32xf32>
    %9 = arith.truncf %8 : vector<16x32xf32> to vector<16x32xbf16>
    %10 = vector.shape_cast %9 : vector<16x32xbf16> to vector<2x8x32xbf16>
    %c0_6 = arith.constant 0 : index
    %c0_7 = arith.constant 0 : index
    %11 = vector.load %arg5[%c0_6, %c0_7] : memref<32x32xbf16, #tpu.memory_space<vmem>>, vector<32x32xbf16>
    %cst_8 = arith.constant dense<0.000000e+00> : vector<16x32xf32>
    %12 = tpu.matmul %3, %11, %cst_8 {dimension_numbers = #tpu.dot_dimension_numbers<[1], [0], [0], [1], [0, 0, 1, 1], [], []>} : vector<16x32xbf16>, vector<32x32xbf16>, vector<16x32xf32> -> vector<16x32xf32>
    %c0_9 = arith.constant 0 : index
    %c0_10 = arith.constant 0 : index
    %13 = vector.load %arg8[%c0_9, %c0_10] : memref<1x32xf32, #tpu.memory_space<vmem>>, vector<1x32xf32>
    %14 = vector.broadcast %13 : vector<1x32xf32> to vector<16x32xf32>
    %15 = arith.addf %12, %14 : vector<16x32xf32>
    %16 = arith.truncf %15 : vector<16x32xf32> to vector<16x32xbf16>
    %17 = vector.shape_cast %16 : vector<16x32xbf16> to vector<2x8x32xbf16>
    %c0_11 = arith.constant 0 : index
    %c0_12 = arith.constant 0 : index
    %18 = vector.load %arg6[%c0_11, %c0_12] : memref<32x32xbf16, #tpu.memory_space<vmem>>, vector<32x32xbf16>
    %cst_13 = arith.constant dense<0.000000e+00> : vector<16x32xf32>
    %19 = tpu.matmul %3, %18, %cst_13 {dimension_numbers = #tpu.dot_dimension_numbers<[1], [0], [0], [1], [0, 0, 1, 1], [], []>} : vector<16x32xbf16>, vector<32x32xbf16>, vector<16x32xf32> -> vector<16x32xf32>
    %c0_14 = arith.constant 0 : index
    %c0_15 = arith.constant 0 : index
    %20 = vector.load %arg9[%c0_14, %c0_15] : memref<1x32xf32, #tpu.memory_space<vmem>>, vector<1x32xf32>
    %21 = vector.broadcast %20 : vector<1x32xf32> to vector<16x32xf32>
    %22 = arith.addf %19, %21 : vector<16x32xf32>
    %23 = arith.truncf %22 : vector<16x32xf32> to vector<16x32xbf16>
    %24 = vector.shape_cast %23 : vector<16x32xbf16> to vector<2x8x32xbf16>
    %25 = tpu.iota {dimensions = array<i32: 0>} : vector<8x8xi32>
    %26 = tpu.iota {dimensions = array<i32: 1>} : vector<8x8xi32>
    %27 = arith.cmpi sge, %25, %26 : vector<8x8xi32>
    %28 = vector.shape_cast %27 : vector<8x8xi1> to vector<1x8x8xi1>
    %c0_16 = arith.constant 0 : index
    %c0_17 = arith.constant 0 : index
    %c0_18 = arith.constant 0 : index
    %29 = vector.load %arg3[%c0_16, %c0_17, %c0_18] : memref<2x1x8xf32, #tpu.memory_space<vmem>>, vector<2x1x8xf32>
    %30 = vector.extract_strided_slice %10 {offsets = [0, 0, 0], sizes = [2, 8, 8], strides = [1, 1, 1]} : vector<2x8x32xbf16> to vector<2x8x8xbf16>
    %31 = vector.extract_strided_slice %17 {offsets = [0, 0, 0], sizes = [2, 8, 8], strides = [1, 1, 1]} : vector<2x8x32xbf16> to vector<2x8x8xbf16>
    %32 = vector.extract_strided_slice %24 {offsets = [0, 0, 0], sizes = [2, 8, 8], strides = [1, 1, 1]} : vector<2x8x32xbf16> to vector<2x8x8xbf16>
    "tpu.trace_start"() <{level = 10 : i32, message = "bqd,bkd->bqk"}> : () -> ()
    %cst_19 = arith.constant dense<0.000000e+00> : vector<2x8x8xf32>
    %33 = tpu.matmul %30, %31, %cst_19 {dimension_numbers = #tpu.dot_dimension_numbers<[2], [2], [1], [1], [0, 0, 0, 1, 1, 1], [0], [0]>} : vector<2x8x8xbf16>, vector<2x8x8xbf16>, vector<2x8x8xf32> -> vector<2x8x8xf32>
    "tpu.trace_stop"() : () -> ()
    %34 = vector.broadcast %29 : vector<2x1x8xf32> to vector<2x8x8xf32>
    %35 = arith.addf %33, %34 : vector<2x8x8xf32>
    %cst_20 = arith.constant -1.000000e+30 : f32
    %36 = vector.shape_cast %28 : vector<1x8x8xi1> to vector<1x8x8xi1>
    %37 = vector.broadcast %36 : vector<1x8x8xi1> to vector<2x8x8xi1>
    %38 = vector.broadcast %cst_20 : f32 to vector<2x8x8xf32>
    %39 = arith.select %37, %35, %38 : vector<2x8x8xi1>, vector<2x8x8xf32>
    %cst_21 = arith.constant dense<0xFF800000> : vector<2x8xf32>
    %40 = vector.multi_reduction <maximumf>, %39, %cst_21 [2] : vector<2x8x8xf32> to vector<2x8xf32>
    %41 = vector.shape_cast %40 : vector<2x8xf32> to vector<2x8x1xf32>
    %42 = vector.broadcast %41 : vector<2x8x1xf32> to vector<2x8x8xf32>
    %43 = arith.subf %39, %42 : vector<2x8x8xf32>
    %44 = math.exp %43 : vector<2x8x8xf32>
    %cst_22 = arith.constant dense<0.000000e+00> : vector<2x8xf32>
    %45 = vector.multi_reduction <add>, %44, %cst_22 [2] : vector<2x8x8xf32> to vector<2x8xf32>
    %46 = vector.shape_cast %45 : vector<2x8xf32> to vector<2x8x1xf32>
    %47 = tpu.reciprocal %46 : vector<2x8x1xf32> -> vector<2x8x1xf32>
    %48 = vector.broadcast %47 : vector<2x8x1xf32> to vector<2x8x8xf32>
    %49 = arith.mulf %44, %48 : vector<2x8x8xf32>
    %50 = arith.truncf %49 : vector<2x8x8xf32> to vector<2x8x8xbf16>
    "tpu.trace_start"() <{level = 10 : i32, message = "bqk,bkd->bqd"}> : () -> ()
    %cst_23 = arith.constant dense<0.000000e+00> : vector<2x8x8xf32>
    %51 = tpu.matmul %50, %32, %cst_23 {dimension_numbers = #tpu.dot_dimension_numbers<[2], [1], [1], [2], [0, 0, 0, 1, 1, 2], [0], [0]>} : vector<2x8x8xbf16>, vector<2x8x8xbf16>, vector<2x8x8xf32> -> vector<2x8x8xf32>
    "tpu.trace_stop"() : () -> ()
    %52 = vector.extract_strided_slice %10 {offsets = [0, 0, 8], sizes = [2, 8, 8], strides = [1, 1, 1]} : vector<2x8x32xbf16> to vector<2x8x8xbf16>
    %53 = vector.extract_strided_slice %17 {offsets = [0, 0, 8], sizes = [2, 8, 8], strides = [1, 1, 1]} : vector<2x8x32xbf16> to vector<2x8x8xbf16>
    %54 = vector.extract_strided_slice %24 {offsets = [0, 0, 8], sizes = [2, 8, 8], strides = [1, 1, 1]} : vector<2x8x32xbf16> to vector<2x8x8xbf16>
    "tpu.trace_start"() <{level = 10 : i32, message = "bqd,bkd->bqk"}> : () -> ()
    %cst_24 = arith.constant dense<0.000000e+00> : vector<2x8x8xf32>
    %55 = tpu.matmul %52, %53, %cst_24 {dimension_numbers = #tpu.dot_dimension_numbers<[2], [2], [1], [1], [0, 0, 0, 1, 1, 1], [0], [0]>} : vector<2x8x8xbf16>, vector<2x8x8xbf16>, vector<2x8x8xf32> -> vector<2x8x8xf32>
    "tpu.trace_stop"() : () -> ()
    %56 = vector.broadcast %29 : vector<2x1x8xf32> to vector<2x8x8xf32>
    %57 = arith.addf %55, %56 : vector<2x8x8xf32>
    %cst_25 = arith.constant -1.000000e+30 : f32
    %58 = vector.shape_cast %28 : vector<1x8x8xi1> to vector<1x8x8xi1>
    %59 = vector.broadcast %58 : vector<1x8x8xi1> to vector<2x8x8xi1>
    %60 = vector.broadcast %cst_25 : f32 to vector<2x8x8xf32>
    %61 = arith.select %59, %57, %60 : vector<2x8x8xi1>, vector<2x8x8xf32>
    %cst_26 = arith.constant dense<0xFF800000> : vector<2x8xf32>
    %62 = vector.multi_reduction <maximumf>, %61, %cst_26 [2] : vector<2x8x8xf32> to vector<2x8xf32>
    %63 = vector.shape_cast %62 : vector<2x8xf32> to vector<2x8x1xf32>
    %64 = vector.broadcast %63 : vector<2x8x1xf32> to vector<2x8x8xf32>
    %65 = arith.subf %61, %64 : vector<2x8x8xf32>
    %66 = math.exp %65 : vector<2x8x8xf32>
    %cst_27 = arith.constant dense<0.000000e+00> : vector<2x8xf32>
    %67 = vector.multi_reduction <add>, %66, %cst_27 [2] : vector<2x8x8xf32> to vector<2x8xf32>
    %68 = vector.shape_cast %67 : vector<2x8xf32> to vector<2x8x1xf32>
    %69 = tpu.reciprocal %68 : vector<2x8x1xf32> -> vector<2x8x1xf32>
    %70 = vector.broadcast %69 : vector<2x8x1xf32> to vector<2x8x8xf32>
    %71 = arith.mulf %66, %70 : vector<2x8x8xf32>
    %72 = arith.truncf %71 : vector<2x8x8xf32> to vector<2x8x8xbf16>
    "tpu.trace_start"() <{level = 10 : i32, message = "bqk,bkd->bqd"}> : () -> ()
    %cst_28 = arith.constant dense<0.000000e+00> : vector<2x8x8xf32>
    %73 = tpu.matmul %72, %54, %cst_28 {dimension_numbers = #tpu.dot_dimension_numbers<[2], [1], [1], [2], [0, 0, 0, 1, 1, 2], [0], [0]>} : vector<2x8x8xbf16>, vector<2x8x8xbf16>, vector<2x8x8xf32> -> vector<2x8x8xf32>
    "tpu.trace_stop"() : () -> ()
    %74 = vector.extract_strided_slice %10 {offsets = [0, 0, 16], sizes = [2, 8, 8], strides = [1, 1, 1]} : vector<2x8x32xbf16> to vector<2x8x8xbf16>
    %75 = vector.extract_strided_slice %17 {offsets = [0, 0, 16], sizes = [2, 8, 8], strides = [1, 1, 1]} : vector<2x8x32xbf16> to vector<2x8x8xbf16>
    %76 = vector.extract_strided_slice %24 {offsets = [0, 0, 16], sizes = [2, 8, 8], strides = [1, 1, 1]} : vector<2x8x32xbf16> to vector<2x8x8xbf16>
    "tpu.trace_start"() <{level = 10 : i32, message = "bqd,bkd->bqk"}> : () -> ()
    %cst_29 = arith.constant dense<0.000000e+00> : vector<2x8x8xf32>
    %77 = tpu.matmul %74, %75, %cst_29 {dimension_numbers = #tpu.dot_dimension_numbers<[2], [2], [1], [1], [0, 0, 0, 1, 1, 1], [0], [0]>} : vector<2x8x8xbf16>, vector<2x8x8xbf16>, vector<2x8x8xf32> -> vector<2x8x8xf32>
    "tpu.trace_stop"() : () -> ()
    %78 = vector.broadcast %29 : vector<2x1x8xf32> to vector<2x8x8xf32>
    %79 = arith.addf %77, %78 : vector<2x8x8xf32>
    %cst_30 = arith.constant -1.000000e+30 : f32
    %80 = vector.shape_cast %28 : vector<1x8x8xi1> to vector<1x8x8xi1>
    %81 = vector.broadcast %80 : vector<1x8x8xi1> to vector<2x8x8xi1>
    %82 = vector.broadcast %cst_30 : f32 to vector<2x8x8xf32>
    %83 = arith.select %81, %79, %82 : vector<2x8x8xi1>, vector<2x8x8xf32>
    %cst_31 = arith.constant dense<0xFF800000> : vector<2x8xf32>
    %84 = vector.multi_reduction <maximumf>, %83, %cst_31 [2] : vector<2x8x8xf32> to vector<2x8xf32>
    %85 = vector.shape_cast %84 : vector<2x8xf32> to vector<2x8x1xf32>
    %86 = vector.broadcast %85 : vector<2x8x1xf32> to vector<2x8x8xf32>
    %87 = arith.subf %83, %86 : vector<2x8x8xf32>
    %88 = math.exp %87 : vector<2x8x8xf32>
    %cst_32 = arith.constant dense<0.000000e+00> : vector<2x8xf32>
    %89 = vector.multi_reduction <add>, %88, %cst_32 [2] : vector<2x8x8xf32> to vector<2x8xf32>
    %90 = vector.shape_cast %89 : vector<2x8xf32> to vector<2x8x1xf32>
    %91 = tpu.reciprocal %90 : vector<2x8x1xf32> -> vector<2x8x1xf32>
    %92 = vector.broadcast %91 : vector<2x8x1xf32> to vector<2x8x8xf32>
    %93 = arith.mulf %88, %92 : vector<2x8x8xf32>
    %94 = arith.truncf %93 : vector<2x8x8xf32> to vector<2x8x8xbf16>
    "tpu.trace_start"() <{level = 10 : i32, message = "bqk,bkd->bqd"}> : () -> ()
    %cst_33 = arith.constant dense<0.000000e+00> : vector<2x8x8xf32>
    %95 = tpu.matmul %94, %76, %cst_33 {dimension_numbers = #tpu.dot_dimension_numbers<[2], [1], [1], [2], [0, 0, 0, 1, 1, 2], [0], [0]>} : vector<2x8x8xbf16>, vector<2x8x8xbf16>, vector<2x8x8xf32> -> vector<2x8x8xf32>
    "tpu.trace_stop"() : () -> ()
    %96 = vector.extract_strided_slice %10 {offsets = [0, 0, 24], sizes = [2, 8, 8], strides = [1, 1, 1]} : vector<2x8x32xbf16> to vector<2x8x8xbf16>
    %97 = vector.extract_strided_slice %17 {offsets = [0, 0, 24], sizes = [2, 8, 8], strides = [1, 1, 1]} : vector<2x8x32xbf16> to vector<2x8x8xbf16>
    %98 = vector.extract_strided_slice %24 {offsets = [0, 0, 24], sizes = [2, 8, 8], strides = [1, 1, 1]} : vector<2x8x32xbf16> to vector<2x8x8xbf16>
    "tpu.trace_start"() <{level = 10 : i32, message = "bqd,bkd->bqk"}> : () -> ()
    %cst_34 = arith.constant dense<0.000000e+00> : vector<2x8x8xf32>
    %99 = tpu.matmul %96, %97, %cst_34 {dimension_numbers = #tpu.dot_dimension_numbers<[2], [2], [1], [1], [0, 0, 0, 1, 1, 1], [0], [0]>} : vector<2x8x8xbf16>, vector<2x8x8xbf16>, vector<2x8x8xf32> -> vector<2x8x8xf32>
    "tpu.trace_stop"() : () -> ()
    %100 = vector.broadcast %29 : vector<2x1x8xf32> to vector<2x8x8xf32>
    %101 = arith.addf %99, %100 : vector<2x8x8xf32>
    %cst_35 = arith.constant -1.000000e+30 : f32
    %102 = vector.shape_cast %28 : vector<1x8x8xi1> to vector<1x8x8xi1>
    %103 = vector.broadcast %102 : vector<1x8x8xi1> to vector<2x8x8xi1>
    %104 = vector.broadcast %cst_35 : f32 to vector<2x8x8xf32>
    %105 = arith.select %103, %101, %104 : vector<2x8x8xi1>, vector<2x8x8xf32>
    %cst_36 = arith.constant dense<0xFF800000> : vector<2x8xf32>
    %106 = vector.multi_reduction <maximumf>, %105, %cst_36 [2] : vector<2x8x8xf32> to vector<2x8xf32>
    %107 = vector.shape_cast %106 : vector<2x8xf32> to vector<2x8x1xf32>
    %108 = vector.broadcast %107 : vector<2x8x1xf32> to vector<2x8x8xf32>
    %109 = arith.subf %105, %108 : vector<2x8x8xf32>
    %110 = math.exp %109 : vector<2x8x8xf32>
    %cst_37 = arith.constant dense<0.000000e+00> : vector<2x8xf32>
    %111 = vector.multi_reduction <add>, %110, %cst_37 [2] : vector<2x8x8xf32> to vector<2x8xf32>
    %112 = vector.shape_cast %111 : vector<2x8xf32> to vector<2x8x1xf32>
    %113 = tpu.reciprocal %112 : vector<2x8x1xf32> -> vector<2x8x1xf32>
    %114 = vector.broadcast %113 : vector<2x8x1xf32> to vector<2x8x8xf32>
    %115 = arith.mulf %110, %114 : vector<2x8x8xf32>
    %116 = arith.truncf %115 : vector<2x8x8xf32> to vector<2x8x8xbf16>
    "tpu.trace_start"() <{level = 10 : i32, message = "bqk,bkd->bqd"}> : () -> ()
    %cst_38 = arith.constant dense<0.000000e+00> : vector<2x8x8xf32>
    %117 = tpu.matmul %116, %98, %cst_38 {dimension_numbers = #tpu.dot_dimension_numbers<[2], [1], [1], [2], [0, 0, 0, 1, 1, 2], [0], [0]>} : vector<2x8x8xbf16>, vector<2x8x8xbf16>, vector<2x8x8xf32> -> vector<2x8x8xf32>
    "tpu.trace_stop"() : () -> ()
    %118 = tpu.concatenate %51, %73, %95, %117 in 2 : vector<2x8x8xf32>, vector<2x8x8xf32>, vector<2x8x8xf32>, vector<2x8x8xf32> -> vector<2x8x32xf32>
    %119 = vector.shape_cast %118 : vector<2x8x32xf32> to vector<16x32xf32>
    %120 = arith.truncf %119 : vector<16x32xf32> to vector<16x32xbf16>
    %c0_39 = arith.constant 0 : index
    %c0_40 = arith.constant 0 : index
    %c0_41 = arith.constant 0 : index
    %121 = vector.load %arg15[%c0_39, %c0_40, %c0_41] : memref<2x8x32xf32, #tpu.memory_space<vmem>>, vector<2x8x32xf32>
    %c0_42 = arith.constant 0 : index
    %c0_43 = arith.constant 0 : index
    %122 = vector.load %arg10[%c0_42, %c0_43] : memref<32x32xbf16, #tpu.memory_space<vmem>>, vector<32x32xbf16>
    %cst_44 = arith.constant dense<0.000000e+00> : vector<16x32xf32>
    %123 = tpu.matmul %120, %122, %cst_44 {dimension_numbers = #tpu.dot_dimension_numbers<[1], [0], [0], [1], [0, 0, 1, 1], [], []>} : vector<16x32xbf16>, vector<32x32xbf16>, vector<16x32xf32> -> vector<16x32xf32>
    %124 = vector.shape_cast %123 : vector<16x32xf32> to vector<2x8x32xf32>
    %125 = arith.addf %121, %124 : vector<2x8x32xf32>
    %c0_45 = arith.constant 0 : index
    %c0_46 = arith.constant 0 : index
    %c0_47 = arith.constant 0 : index
    %126 = vector.load %arg15[%c0_45, %c0_46, %c0_47] : memref<2x8x32xf32, #tpu.memory_space<vmem>>, vector<2x8x32xf32>
    tpu.vector_store %arg15[%c0_45, %c0_46, %c0_47], %125 {strides = array<i32>} : memref<2x8x32xf32, #tpu.memory_space<vmem>>, vector<2x8x32xf32>,
    %c0_i32_48 = arith.constant 0 : i32
    %127 = arith.cmpi eq, %arg1, %c0_i32_48 : i32
    %128 = arith.extui %127 : i1 to i32
    %c0_i32_49 = arith.constant 0 : i32
    %129 = arith.cmpi ne, %128, %c0_i32_49 : i32
    scf.if %129 {
      %c0_50 = arith.constant 0 : index
      %c0_51 = arith.constant 0 : index
      %c0_52 = arith.constant 0 : index
      %130 = vector.load %arg2[%c0_50, %c0_51, %c0_52] : memref<2x8x32xf32, #tpu.memory_space<vmem>>, vector<2x8x32xf32>
      %c0_53 = arith.constant 0 : index
      %c0_54 = arith.constant 0 : index
      %c0_55 = arith.constant 0 : index
      %131 = vector.load %arg15[%c0_53, %c0_54, %c0_55] : memref<2x8x32xf32, #tpu.memory_space<vmem>>, vector<2x8x32xf32>
      %132 = arith.addf %130, %131 : vector<2x8x32xf32>
      %c0_56 = arith.constant 0 : index
      %c0_57 = arith.constant 0 : index
      %133 = vector.load %arg11[%c0_56, %c0_57] : memref<1x32xf32, #tpu.memory_space<vmem>>, vector<1x32xf32>
      %134 = vector.shape_cast %133 : vector<1x32xf32> to vector<1x1x32xf32>
      %135 = vector.broadcast %134 : vector<1x1x32xf32> to vector<2x8x32xf32>
      %136 = arith.addf %132, %135 : vector<2x8x32xf32>
      %cst_58 = arith.constant dense<0.000000e+00> : vector<2x8xf32>
      %137 = vector.multi_reduction <add>, %136, %cst_58 [2] : vector<2x8x32xf32> to vector<2x8xf32>
      %138 = vector.shape_cast %137 : vector<2x8xf32> to vector<2x8x1xf32>
      %cst_59 = arith.constant 3.200000e+01 : f32
      %139 = vector.broadcast %cst_59 : f32 to vector<2x8x1xf32>
      %140 = arith.divf %138, %139 : vector<2x8x1xf32>
      %141 = vector.broadcast %140 : vector<2x8x1xf32> to vector<2x8x32xf32>
      %142 = arith.subf %136, %141 : vector<2x8x32xf32>
      %143 = arith.mulf %142, %142 : vector<2x8x32xf32>
      %cst_60 = arith.constant dense<0.000000e+00> : vector<2x8xf32>
      %144 = vector.multi_reduction <add>, %143, %cst_60 [2] : vector<2x8x32xf32> to vector<2x8xf32>
      %145 = vector.shape_cast %144 : vector<2x8xf32> to vector<2x8x1xf32>
      %cst_61 = arith.constant 3.200000e+01 : f32
      %146 = vector.broadcast %cst_61 : f32 to vector<2x8x1xf32>
      %147 = arith.divf %145, %146 : vector<2x8x1xf32>
      %148 = vector.broadcast %140 : vector<2x8x1xf32> to vector<2x8x32xf32>
      %149 = arith.subf %136, %148 : vector<2x8x32xf32>
      %cst_62 = arith.constant 9.99999974E-6 : f32
      %150 = vector.broadcast %cst_62 : f32 to vector<2x8x1xf32>
      %151 = arith.addf %147, %150 : vector<2x8x1xf32>
      %152 = math.rsqrt %151 : vector<2x8x1xf32>
      %153 = vector.broadcast %152 : vector<2x8x1xf32> to vector<2x8x32xf32>
      %154 = arith.mulf %149, %153 : vector<2x8x32xf32>
      %c0_63 = arith.constant 0 : index
      %c0_64 = arith.constant 0 : index
      %155 = vector.load %arg12[%c0_63, %c0_64] : memref<1x32xf32, #tpu.memory_space<vmem>>, vector<1x32xf32>
      %156 = vector.shape_cast %155 : vector<1x32xf32> to vector<1x1x32xf32>
      %157 = vector.broadcast %156 : vector<1x1x32xf32> to vector<2x8x32xf32>
      %158 = arith.mulf %154, %157 : vector<2x8x32xf32>
      %c0_65 = arith.constant 0 : index
      %c0_66 = arith.constant 0 : index
      %159 = vector.load %arg13[%c0_65, %c0_66] : memref<1x32xf32, #tpu.memory_space<vmem>>, vector<1x32xf32>
      %160 = vector.shape_cast %159 : vector<1x32xf32> to vector<1x1x32xf32>
      %161 = vector.broadcast %160 : vector<1x1x32xf32> to vector<2x8x32xf32>
      %162 = arith.addf %158, %161 : vector<2x8x32xf32>
      %c0_67 = arith.constant 0 : index
      %c0_68 = arith.constant 0 : index
      %c0_69 = arith.constant 0 : index
      %163 = vector.load %arg14[%c0_67, %c0_68, %c0_69] : memref<2x8x32xf32, #tpu.memory_space<vmem>>, vector<2x8x32xf32>
      tpu.vector_store %arg14[%c0_67, %c0_68, %c0_69], %162 {strides = array<i32>} : memref<2x8x32xf32, #tpu.memory_space<vmem>>, vector<2x8x32xf32>,
    } else {
    }
    return
  }
  func.func @transform_0(%arg0: i32, %arg1: i32) -> (i32, i32, i32) {
    %c0_i32 = arith.constant 0 : i32
    %c0_i32_0 = arith.constant 0 : i32
    %c0_i32_1 = arith.constant 0 : i32
    return %arg0, %c0_i32, %c0_i32_0 : i32, i32, i32
  }
  func.func @transform_1(%arg0: i32, %arg1: i32) -> (i32, i32, i32) {
    %c0_i32 = arith.constant 0 : i32
    %c0_i32_0 = arith.constant 0 : i32
    %c0_i32_1 = arith.constant 0 : i32
    return %arg0, %c0_i32, %c0_i32_0 : i32, i32, i32
  }
  func.func @transform_2(%arg0: i32, %arg1: i32) -> (i32, i32) {
    %c0_i32 = arith.constant 0 : i32
    %c0_i32_0 = arith.constant 0 : i32
    return %c0_i32, %arg1 : i32, i32
  }
  func.func @transform_3(%arg0: i32, %arg1: i32) -> (i32, i32) {
    %c0_i32 = arith.constant 0 : i32
    %c0_i32_0 = arith.constant 0 : i32
    return %c0_i32, %arg1 : i32, i32
  }
  func.func @transform_4(%arg0: i32, %arg1: i32) -> (i32, i32) {
    %c0_i32 = arith.constant 0 : i32
    %c0_i32_0 = arith.constant 0 : i32
    return %c0_i32, %arg1 : i32, i32
  }
  func.func @transform_5(%arg0: i32, %arg1: i32) -> (i32, i32) {
    %c0_i32 = arith.constant 0 : i32
    %c0_i32_0 = arith.constant 0 : i32
    return %c0_i32, %arg1 : i32, i32
  }
  func.func @transform_6(%arg0: i32, %arg1: i32) -> (i32, i32) {
    %c0_i32 = arith.constant 0 : i32
    %c0_i32_0 = arith.constant 0 : i32
    return %c0_i32, %arg1 : i32, i32
  }
  func.func @transform_7(%arg0: i32, %arg1: i32) -> (i32, i32) {
    %c0_i32 = arith.constant 0 : i32
    %c0_i32_0 = arith.constant 0 : i32
    return %c0_i32, %arg1 : i32, i32
  }
  func.func @transform_8(%arg0: i32, %arg1: i32) -> (i32, i32) {
    %c0_i32 = arith.constant 0 : i32
    %c0_i32_0 = arith.constant 0 : i32
    return %arg1, %c0_i32 : i32, i32
  }
  func.func @transform_9(%arg0: i32, %arg1: i32) -> (i32, i32) {
    %c0_i32 = arith.constant 0 : i32
    %c0_i32_0 = arith.constant 0 : i32
    %c0_i32_1 = arith.constant 0 : i32
    return %c0_i32, %c0_i32_0 : i32, i32
  }
  func.func @transform_10(%arg0: i32, %arg1: i32) -> (i32, i32) {
    %c0_i32 = arith.constant 0 : i32
    %c0_i32_0 = arith.constant 0 : i32
    %c0_i32_1 = arith.constant 0 : i32
    return %c0_i32, %c0_i32_0 : i32, i32
  }
  func.func @transform_11(%arg0: i32, %arg1: i32) -> (i32, i32) {
    %c0_i32 = arith.constant 0 : i32
    %c0_i32_0 = arith.constant 0 : i32
    %c0_i32_1 = arith.constant 0 : i32
    return %c0_i32, %c0_i32_0 : i32, i32
  }
  func.func @transform_12(%arg0: i32, %arg1: i32) -> (i32, i32, i32) {
    %c0_i32 = arith.constant 0 : i32
    %c0_i32_0 = arith.constant 0 : i32
    %c0_i32_1 = arith.constant 0 : i32
    return %arg0, %c0_i32, %c0_i32_0 : i32, i32, i32
  }
}

module attributes {stable_mosaic.version = 11 : i64} {
  func.func @fc_out_kernel(%arg0: i32, %arg1: i32, %arg2: memref<16x32xf32, #tpu.memory_space<vmem>>, %arg3: memref<32x64xbf16, #tpu.memory_space<vmem>>, %arg4: memref<1x64xf32, #tpu.memory_space<vmem>>, %arg5: memref<16x64xf32, #tpu.memory_space<vmem>>) attributes {dimension_semantics = [#tpu.dimension_semantics<parallel>, #tpu.dimension_semantics<parallel>], iteration_bounds = array<i64: 1, 1>, scalar_prefetch = 0 : i64, scratch_operands = 0 : i64, tpu.core_type = #tpu.core_type<tc>, window_params = [{transform_indices = @transform_0, window_bounds = array<i64: 16, 32>}, {transform_indices = @transform_1, window_bounds = array<i64: 32, 64>}, {transform_indices = @transform_2, window_bounds = array<i64: 1, 64>}, {transform_indices = @transform_3, window_bounds = array<i64: 16, 64>}]} {
    %c0 = arith.constant 0 : index
    %c0_0 = arith.constant 0 : index
    %0 = vector.load %arg2[%c0, %c0_0] : memref<16x32xf32, #tpu.memory_space<vmem>>, vector<16x32xf32>
    %1 = arith.truncf %0 : vector<16x32xf32> to vector<16x32xbf16>
    %c0_1 = arith.constant 0 : index
    %c0_2 = arith.constant 0 : index
    %2 = vector.load %arg3[%c0_1, %c0_2] : memref<32x64xbf16, #tpu.memory_space<vmem>>, vector<32x64xbf16>
    %cst = arith.constant dense<0.000000e+00> : vector<16x64xf32>
    %3 = tpu.matmul %1, %2, %cst {dimension_numbers = #tpu.dot_dimension_numbers<[1], [0], [0], [1], [0, 0, 1, 1], [], []>} : vector<16x32xbf16>, vector<32x64xbf16>, vector<16x64xf32> -> vector<16x64xf32>
    %c0_3 = arith.constant 0 : index
    %c0_4 = arith.constant 0 : index
    %4 = vector.load %arg4[%c0_3, %c0_4] : memref<1x64xf32, #tpu.memory_space<vmem>>, vector<1x64xf32>
    %5 = vector.broadcast %4 : vector<1x64xf32> to vector<16x64xf32>
    %6 = arith.addf %3, %5 : vector<16x64xf32>
    %c0_5 = arith.constant 0 : index
    %c0_6 = arith.constant 0 : index
    %7 = vector.load %arg5[%c0_5, %c0_6] : memref<16x64xf32, #tpu.memory_space<vmem>>, vector<16x64xf32>
    tpu.vector_store %arg5[%c0_5, %c0_6], %6 {strides = array<i32>} : memref<16x64xf32, #tpu.memory_space<vmem>>, vector<16x64xf32>,
    return
  }
  func.func @transform_0(%arg0: i32, %arg1: i32) -> (i32, i32) {
    %c0_i32 = arith.constant 0 : i32
    %c0_i32_0 = arith.constant 0 : i32
    return %arg0, %c0_i32 : i32, i32
  }
  func.func @transform_1(%arg0: i32, %arg1: i32) -> (i32, i32) {
    %c0_i32 = arith.constant 0 : i32
    %c0_i32_0 = arith.constant 0 : i32
    return %c0_i32, %arg1 : i32, i32
  }
  func.func @transform_2(%arg0: i32, %arg1: i32) -> (i32, i32) {
    %c0_i32 = arith.constant 0 : i32
    %c0_i32_0 = arith.constant 0 : i32
    return %c0_i32, %arg1 : i32, i32
  }
  func.func @transform_3(%arg0: i32, %arg1: i32) -> (i32, i32) {
    %c0_i32 = arith.constant 0 : i32
    return %arg0, %arg1 : i32, i32
  }
}

module attributes {stable_mosaic.version = 11 : i64} {
  func.func @ffn_block_kernel(%arg0: i32, %arg1: i32, %arg2: memref<16x32xf32, #tpu.memory_space<vmem>>, %arg3: memref<32x64xbf16, #tpu.memory_space<vmem>>, %arg4: memref<1x64xf32, #tpu.memory_space<vmem>>, %arg5: memref<64x32xbf16, #tpu.memory_space<vmem>>, %arg6: memref<1x32xf32, #tpu.memory_space<vmem>>, %arg7: memref<1x32xf32, #tpu.memory_space<vmem>>, %arg8: memref<1x32xf32, #tpu.memory_space<vmem>>, %arg9: memref<16x32xf32, #tpu.memory_space<vmem>>, %arg10: memref<16x32xf32, #tpu.memory_space<vmem>>, %arg11: memref<16x32xbf16, #tpu.memory_space<vmem>>) attributes {dimension_semantics = [#tpu.dimension_semantics<parallel>, #tpu.dimension_semantics<arbitrary>], iteration_bounds = array<i64: 1, 1>, scalar_prefetch = 0 : i64, scratch_operands = 2 : i64, tpu.core_type = #tpu.core_type<tc>, window_params = [{transform_indices = @transform_0, window_bounds = array<i64: 16, 32>}, {transform_indices = @transform_1, window_bounds = array<i64: 32, 64>}, {transform_indices = @transform_2, window_bounds = array<i64: 1, 64>}, {transform_indices = @transform_3, window_bounds = array<i64: 64, 32>}, {pipeline_mode = #tpu.pipeline_mode<synchronous>, transform_indices = @transform_4, window_bounds = array<i64: 1, 32>}, {pipeline_mode = #tpu.pipeline_mode<synchronous>, transform_indices = @transform_5, window_bounds = array<i64: 1, 32>}, {pipeline_mode = #tpu.pipeline_mode<synchronous>, transform_indices = @transform_6, window_bounds = array<i64: 1, 32>}, {transform_indices = @transform_7, window_bounds = array<i64: 16, 32>}]} {
    %c0_i32 = arith.constant 0 : i32
    %0 = arith.cmpi eq, %arg1, %c0_i32 : i32
    %1 = arith.extui %0 : i1 to i32
    %c0_i32_0 = arith.constant 0 : i32
    %2 = arith.cmpi ne, %1, %c0_i32_0 : i32
    scf.if %2 {
      %cst_16 = arith.constant 0.000000e+00 : f32
      %20 = vector.broadcast %cst_16 : f32 to vector<16x32xf32>
      %c0_17 = arith.constant 0 : index
      %c0_18 = arith.constant 0 : index
      %21 = vector.load %arg10[%c0_17, %c0_18] : memref<16x32xf32, #tpu.memory_space<vmem>>, vector<16x32xf32>
      tpu.vector_store %arg10[%c0_17, %c0_18], %20 {strides = array<i32>} : memref<16x32xf32, #tpu.memory_space<vmem>>, vector<16x32xf32>,
      %c0_19 = arith.constant 0 : index
      %c0_20 = arith.constant 0 : index
      %22 = vector.load %arg2[%c0_19, %c0_20] : memref<16x32xf32, #tpu.memory_space<vmem>>, vector<16x32xf32>
      %23 = arith.truncf %22 : vector<16x32xf32> to vector<16x32xbf16>
      %c0_21 = arith.constant 0 : index
      %c0_22 = arith.constant 0 : index
      %24 = vector.load %arg11[%c0_21, %c0_22] : memref<16x32xbf16, #tpu.memory_space<vmem>>, vector<16x32xbf16>
      tpu.vector_store %arg11[%c0_21, %c0_22], %23 {strides = array<i32>} : memref<16x32xbf16, #tpu.memory_space<vmem>>, vector<16x32xbf16>,
    } else {
    }
    %c0 = arith.constant 0 : index
    %c0_1 = arith.constant 0 : index
    %3 = vector.load %arg11[%c0, %c0_1] : memref<16x32xbf16, #tpu.memory_space<vmem>>, vector<16x32xbf16>
    %c0_2 = arith.constant 0 : index
    %c0_3 = arith.constant 0 : index
    %4 = vector.load %arg3[%c0_2, %c0_3] : memref<32x64xbf16, #tpu.memory_space<vmem>>, vector<32x64xbf16>
    %cst = arith.constant dense<0.000000e+00> : vector<16x64xf32>
    %5 = tpu.matmul %3, %4, %cst {dimension_numbers = #tpu.dot_dimension_numbers<[1], [0], [0], [1], [0, 0, 1, 1], [], []>} : vector<16x32xbf16>, vector<32x64xbf16>, vector<16x64xf32> -> vector<16x64xf32>
    %c0_4 = arith.constant 0 : index
    %c0_5 = arith.constant 0 : index
    %6 = vector.load %arg4[%c0_4, %c0_5] : memref<1x64xf32, #tpu.memory_space<vmem>>, vector<1x64xf32>
    %7 = vector.broadcast %6 : vector<1x64xf32> to vector<16x64xf32>
    %8 = arith.addf %5, %7 : vector<16x64xf32>
    %cst_6 = arith.constant 0.000000e+00 : f32
    %9 = vector.broadcast %cst_6 : f32 to vector<16x64xf32>
    %10 = arith.maximumf %8, %9 : vector<16x64xf32>
    %c0_7 = arith.constant 0 : index
    %c0_8 = arith.constant 0 : index
    %11 = vector.load %arg10[%c0_7, %c0_8] : memref<16x32xf32, #tpu.memory_space<vmem>>, vector<16x32xf32>
    %12 = arith.truncf %10 : vector<16x64xf32> to vector<16x64xbf16>
    %c0_9 = arith.constant 0 : index
    %c0_10 = arith.constant 0 : index
    %13 = vector.load %arg5[%c0_9, %c0_10] : memref<64x32xbf16, #tpu.memory_space<vmem>>, vector<64x32xbf16>
    %cst_11 = arith.constant dense<0.000000e+00> : vector<16x32xf32>
    %14 = tpu.matmul %12, %13, %cst_11 {dimension_numbers = #tpu.dot_dimension_numbers<[1], [0], [0], [1], [0, 0, 1, 1], [], []>} : vector<16x64xbf16>, vector<64x32xbf16>, vector<16x32xf32> -> vector<16x32xf32>
    %15 = arith.addf %11, %14 : vector<16x32xf32>
    %c0_12 = arith.constant 0 : index
    %c0_13 = arith.constant 0 : index
    %16 = vector.load %arg10[%c0_12, %c0_13] : memref<16x32xf32, #tpu.memory_space<vmem>>, vector<16x32xf32>
    tpu.vector_store %arg10[%c0_12, %c0_13], %15 {strides = array<i32>} : memref<16x32xf32, #tpu.memory_space<vmem>>, vector<16x32xf32>,
    %c0_i32_14 = arith.constant 0 : i32
    %17 = arith.cmpi eq, %arg1, %c0_i32_14 : i32
    %18 = arith.extui %17 : i1 to i32
    %c0_i32_15 = arith.constant 0 : i32
    %19 = arith.cmpi ne, %18, %c0_i32_15 : i32
    scf.if %19 {
      %c0_16 = arith.constant 0 : index
      %c0_17 = arith.constant 0 : index
      %20 = vector.load %arg2[%c0_16, %c0_17] : memref<16x32xf32, #tpu.memory_space<vmem>>, vector<16x32xf32>
      %c0_18 = arith.constant 0 : index
      %c0_19 = arith.constant 0 : index
      %21 = vector.load %arg10[%c0_18, %c0_19] : memref<16x32xf32, #tpu.memory_space<vmem>>, vector<16x32xf32>
      %22 = arith.addf %20, %21 : vector<16x32xf32>
      %c0_20 = arith.constant 0 : index
      %c0_21 = arith.constant 0 : index
      %23 = vector.load %arg6[%c0_20, %c0_21] : memref<1x32xf32, #tpu.memory_space<vmem>>, vector<1x32xf32>
      %24 = vector.broadcast %23 : vector<1x32xf32> to vector<16x32xf32>
      %25 = arith.addf %22, %24 : vector<16x32xf32>
      %cst_22 = arith.constant dense<0.000000e+00> : vector<16xf32>
      %26 = vector.multi_reduction <add>, %25, %cst_22 [1] : vector<16x32xf32> to vector<16xf32>
      %27 = vector.shape_cast %26 : vector<16xf32> to vector<16x1xf32>
      %cst_23 = arith.constant 3.200000e+01 : f32
      %28 = vector.broadcast %cst_23 : f32 to vector<16x1xf32>
      %29 = arith.divf %27, %28 : vector<16x1xf32>
      %30 = vector.broadcast %29 : vector<16x1xf32> to vector<16x32xf32>
      %31 = arith.subf %25, %30 : vector<16x32xf32>
      %32 = arith.mulf %31, %31 : vector<16x32xf32>
      %cst_24 = arith.constant dense<0.000000e+00> : vector<16xf32>
      %33 = vector.multi_reduction <add>, %32, %cst_24 [1] : vector<16x32xf32> to vector<16xf32>
      %34 = vector.shape_cast %33 : vector<16xf32> to vector<16x1xf32>
      %cst_25 = arith.constant 3.200000e+01 : f32
      %35 = vector.broadcast %cst_25 : f32 to vector<16x1xf32>
      %36 = arith.divf %34, %35 : vector<16x1xf32>
      %37 = vector.broadcast %29 : vector<16x1xf32> to vector<16x32xf32>
      %38 = arith.subf %25, %37 : vector<16x32xf32>
      %cst_26 = arith.constant 9.99999974E-6 : f32
      %39 = vector.broadcast %cst_26 : f32 to vector<16x1xf32>
      %40 = arith.addf %36, %39 : vector<16x1xf32>
      %41 = math.rsqrt %40 : vector<16x1xf32>
      %42 = vector.broadcast %41 : vector<16x1xf32> to vector<16x32xf32>
      %43 = arith.mulf %38, %42 : vector<16x32xf32>
      %c0_27 = arith.constant 0 : index
      %c0_28 = arith.constant 0 : index
      %44 = vector.load %arg7[%c0_27, %c0_28] : memref<1x32xf32, #tpu.memory_space<vmem>>, vector<1x32xf32>
      %45 = vector.broadcast %44 : vector<1x32xf32> to vector<16x32xf32>
      %46 = arith.mulf %43, %45 : vector<16x32xf32>
      %c0_29 = arith.constant 0 : index
      %c0_30 = arith.constant 0 : index
      %47 = vector.load %arg8[%c0_29, %c0_30] : memref<1x32xf32, #tpu.memory_space<vmem>>, vector<1x32xf32>
      %48 = vector.broadcast %47 : vector<1x32xf32> to vector<16x32xf32>
      %49 = arith.addf %46, %48 : vector<16x32xf32>
      %c0_31 = arith.constant 0 : index
      %c0_32 = arith.constant 0 : index
      %50 = vector.load %arg9[%c0_31, %c0_32] : memref<16x32xf32, #tpu.memory_space<vmem>>, vector<16x32xf32>
      tpu.vector_store %arg9[%c0_31, %c0_32], %49 {strides = array<i32>} : memref<16x32xf32, #tpu.memory_space<vmem>>, vector<16x32xf32>,
    } else {
    }
    return
  }
  func.func @transform_0(%arg0: i32, %arg1: i32) -> (i32, i32) {
    %c0_i32 = arith.constant 0 : i32
    %c0_i32_0 = arith.constant 0 : i32
    return %arg0, %c0_i32 : i32, i32
  }
  func.func @transform_1(%arg0: i32, %arg1: i32) -> (i32, i32) {
    %c0_i32 = arith.constant 0 : i32
    %c0_i32_0 = arith.constant 0 : i32
    return %c0_i32, %arg1 : i32, i32
  }
  func.func @transform_2(%arg0: i32, %arg1: i32) -> (i32, i32) {
    %c0_i32 = arith.constant 0 : i32
    %c0_i32_0 = arith.constant 0 : i32
    return %c0_i32, %arg1 : i32, i32
  }
  func.func @transform_3(%arg0: i32, %arg1: i32) -> (i32, i32) {
    %c0_i32 = arith.constant 0 : i32
    %c0_i32_0 = arith.constant 0 : i32
    return %arg1, %c0_i32 : i32, i32
  }
  func.func @transform_4(%arg0: i32, %arg1: i32) -> (i32, i32) {
    %c0_i32 = arith.constant 0 : i32
    %c0_i32_0 = arith.constant 0 : i32
    %c0_i32_1 = arith.constant 0 : i32
    return %c0_i32, %c0_i32_0 : i32, i32
  }
  func.func @transform_5(%arg0: i32, %arg1: i32) -> (i32, i32) {
    %c0_i32 = arith.constant 0 : i32
    %c0_i32_0 = arith.constant 0 : i32
    %c0_i32_1 = arith.constant 0 : i32
    return %c0_i32, %c0_i32_0 : i32, i32
  }
  func.func @transform_6(%arg0: i32, %arg1: i32) -> (i32, i32) {
    %c0_i32 = arith.constant 0 : i32
    %c0_i32_0 = arith.constant 0 : i32
    %c0_i32_1 = arith.constant 0 : i32
    return %c0_i32, %c0_i32_0 : i32, i32
  }
  func.func @transform_7(%arg0: i32, %arg1: i32) -> (i32, i32) {
    %c0_i32 = arith.constant 0 : i32
    %c0_i32_0 = arith.constant 0 : i32
    return %arg0, %c0_i32 : i32, i32
  }
}

</mosaic_0001>

<bundles_post_ra>
// kernel: decoder_only_transformer_forward.9
= control target key start
LH: loop header
LB: loop body
LE: loop exit
PB: predicated region body
PF: predicated region fallthrough
CT: control target
= control target key end

     0   :  { %v152_v1 = vmov 0.0   ;;  %vm153_vm0 = vmmov 0   ;;  %s204_s0 = inlined_call_operand.vmem [shape: f32[16,32], index: 0, kind: input, shape index: {}]   ;;  %s205_s1 = inlined_call_operand.vmem [shape: bf16[32,64], index: 1, kind: input, shape index: {}]   ;;  %s206_s2 = inlined_call_operand.vmem [shape: f32[1,64], index: 2, kind: input, shape index: {}]   ;;  %s207_s3 = inlined_call_operand.hbm [shape: f32[16,64], index: 3, kind: output, shape index: {}]  }
   0x1   :  { %v126_v0 = vld [vmem:[%s205_s1] sm:$0xff]   ;;  %113 = vmatprep.subr.bf16.mxu0 %v152_v1  ;;  %v127_v2 = vld [vmem:[%s205_s1 + $0x8] sm:$0xff]   ;;  %117 = vmatprep.mubr.msk.bf16.mxu0 %vm153_vm0, %v152_v1 }
   0x2   :  { %114 = vmatpush3.bf16.msra.mxu0 %v126_v0  ;;  %v16_v3 = vld [vmem:[%s204_s0] sm:$0xff]  ;;  %v17_v4 = vld [vmem:[%s204_s0 + $0x8] sm:$0xff] }
   0x3   :  { %115 = vmatprep.subr.bf16.mxu0 %v152_v1 }
   0x4   :  { %8 = vsyncpa [#allocation3], 0  ;;  %v18_v5 = vpack.c.bf16 %v17_v4, %v16_v3  ;;  %vm42_vm1 = vcmask 261120   ;;  %v106_v6 = vld [vmem:[%s206_s2] ss:$0 sm:$0xff]  ;;  %s154_s1 = smov [#allocation2]  }
   0x5   :  { %s95_s22 = sshll.u32 %s154_s1, 4  ;;  %vm87_vm2 = vcmask 523264   ;;  %s96_s22 = int_to_ptr.vmem [resolvable:$true] %s95_s22 }
   0x6   :  { %116 = vmatpush3.bf16.msra.mxu0 %v127_v2  ;;  %s128_s0 = scalar_lea.vmem %s96_s22, 256  ;;  %p133_p1 = scmp.lt.s32.totalorder %s96_s22, %s96_s22 }
   0x7   :  { %p129_p0 = scmp.ne.s32.totalorder %s96_s22, %s128_s0  ;;  %p134_p2 = scmp.lt.s32.totalorder %s128_s0, %s128_s0 }
   0x9   :  { %118 = vmatmul.mubr.msk.bf16.vlgmr.msra.gmra.mrb[0].mxu0 %vm42_vm1, %v18_v5  ;;  %p135_p3 = por %p134_p2, %p133_p1 }
   0xb   :  { %p136_p4 = pnand %p135_p3, %p129_p0 }
  0xdc   :  { %v80_v7 = vpop.f32.mrb[0].mxu0 }
  0xdd   :  { %v81_v8 = vadd.f32 %v106_v6, %v80_v7  ;;  %v119_v9 = vpop.f32.mrb[1].mxu0 }
  0xde   :  { %v83_v10 = vpop.f32.mrb[2].mxu0 }
  0xdf   :  { %88 = vst.msk [vmem:[#allocation2] sm:$0xff] %vm87_vm2, %v81_v8  ;;  %v84_v11 = vadd.f32 %v106_v6, %v83_v10  ;;  %v120_v12 = vpop.f32.mrb[3].mxu0 }
  0xe1   :  { %89 = vst.msk [vmem:[#allocation2 + $0x8] sm:$0xff] %vm87_vm2, %v84_v11 }
  0xe2   :  { %139 = shalt.err (!%p136_p4)
}
  0xe3   :  { %s140_s24 = scalar_lea.hbm %s207_s3, 256 }
  0xe4   :  { %p141_p5 = scmp.ne.s32.totalorder %s207_s3, %s140_s24  ;;  %p144_p6 = scmp.lt.u32.totalorder %s140_s24, %s207_s3 }
  0xe6   :  { %p146_p7 = pnand %p144_p6, %p141_p5 }
  0xe8   :  { %149 = shalt.err (!%p146_p7)
}
  0xe9   :  { %s155_s29 = smov 128   ;;  %s156_s30 = smov 8  }
  0xea   :  { %101 = dma.vmem_to_hbm [thread:$0]  %s96_s22, 256, %s207_s3, [#allocation3], %s155_s29, %s155_s29, %s156_s30  }
  0xeb   :  { %150 = dma.done.wait [#allocation3], 256  }
  0xec   :  { %151 = vsyncadd [#allocation3], 4294967040 }
  0xed   :  { %105 = vsyncpa [#allocation3], 1 }

// kernel: decoder_only_transformer_forward.6
= control target key start
LH: loop header
LB: loop body
LE: loop exit
PB: predicated region body
PF: predicated region fallthrough
CT: control target
= control target key end

     0   :  { %vm31_vm0 = vcmask 261120   ;;  %v314_v0 = vmov 0.0   ;;  %vm315_vm1 = vmmov 0   ;;  %vm144_vm2 = vcmask 523264   ;;  %s410_s1 = inlined_call_operand.vmem [shape: bf16[32,64], index: 1, kind: input, shape index: {}]   ;;  %s411_s0 = inlined_call_operand.vmem [shape: f32[16,32], index: 0, kind: input, shape index: {}]   ;;  %s412_s3 = inlined_call_operand.vmem [shape: bf16[64,32], index: 3, kind: input, shape index: {}]   ;;  %s413_s2 = inlined_call_operand.vmem [shape: f32[1,64], index: 2, kind: input, shape index: {}]   ;;  %s414_s4 = inlined_call_operand.vmem [shape: f32[1,32], index: 4, kind: input, shape index: {}]   ;;  %s415_s5 = inlined_call_operand.vmem [shape: f32[1,32], index: 5, kind: input, shape index: {}]   ;;  %s416_s6 = inlined_call_operand.vmem [shape: f32[1,32], index: 6, kind: input, shape index: {}]   ;;  %s417_s7 = inlined_call_operand.vmem [shape: f32[16,32], index: 7, kind: output, shape index: {}]  }
   0x1   :  { %282 = vmatprep.subr.bf16.mxu0 %v314_v0  ;;  %v304_v1 = vld [vmem:[%s410_s1] sm:$0xff]   ;;  %286 = vmatprep.mubr.msk.bf16.mxu0 %vm315_vm1, %v314_v0  ;;  %32 = vst.msk [vmem:[#allocation2] sm:$0xff] %vm31_vm0, %v314_v0  ;;  %33 = vst.msk [vmem:[#allocation2 + $0x8] sm:$0xff] %vm31_vm0, %v314_v0  ;;  %v305_v2 = vld [vmem:[%s410_s1 + $0x8] sm:$0xff]  }
   0x2   :  { %290 = vmatprep.subr.bf16.mxu1 %v314_v0  ;;  %298 = vmatprep.mubr.msk.bf16.mxu1 %vm315_vm1, %v314_v0  ;;  %v34_v3 = vld [vmem:[%s411_s0] sm:$0xff]  ;;  %v35_v4 = vld [vmem:[%s411_s0 + $0x8] sm:$0xff]  ;;  %v308_v9 = vld [vmem:[%s412_s3 + $0x10] sm:$0xff]  }
   0x3   :  { %283 = vmatpush3.bf16.msra.mxu0 %v304_v1  ;;  %v36_v5 = vpack.c.bf16 %v35_v4, %v34_v3  ;;  %v306_v6 = vld [vmem:[%s412_s3] sm:$0xff]   ;;  %v307_v7 = vld [vmem:[%s412_s3 + $0x8] sm:$0xff]   ;;  %v309_v10 = vld [vmem:[%s412_s3 + $0x18] sm:$0xff]  }
   0x4   :  { %284 = vmatprep.subr.bf16.mxu0 %v314_v0  ;;  %291 = vmatpush3.bf16.msra.mxu1 %v306_v6  ;;  %v262_v11 = vld [vmem:[%s413_s2] ss:$0 sm:$0xff] }
   0x5   :  { %37 = vst.msk [vmem:[#allocation3] sm:$0xff] %vm31_vm0, %v36_v5  ;;  %292 = vmatprep.subr.bf16.mxu1 %v314_v0  ;;  %v271_v30 = vld [vmem:[%s414_s4] ss:$0 sm:$0xff] }
   0x6   :  { %v272_v55 = vld [vmem:[%s415_s5] ss:$0 sm:$0xff] }
   0x7   :  { %285 = vmatpush3.bf16.msra.mxu0 %v305_v2  ;;  %v273_v57 = vld [vmem:[%s416_s6] ss:$0 sm:$0xff] }
   0x8   :  { %293 = vmatpush3.bf16.msra.mxu1 %v307_v7  ;;  %v109_v21 = vld [vmem:[#allocation2] sm:$0xff]  ;;  %v110_v23 = vld [vmem:[#allocation2 + $0x8] sm:$0xff] }
   0x9   :  { %294 = vmatprep.subr.bf16.mxu1 %v314_v0 }
   0xc   :  { %v38_v8 = vld [vmem:[#allocation3] sm:$0xff]  ;;  %295 = vmatpush3.bf16.msra.mxu1 %v308_v9 }
   0xd   :  { %287 = vmatmul.mubr.msk.bf16.vlgmr.msra.gmra.mrb[0].mxu0 %vm31_vm0, %v38_v8  ;;  %296 = vmatprep.subr.bf16.mxu1 %v314_v0 }
  0x10   :  { %297 = vmatpush3.bf16.msra.mxu1 %v309_v10 }
  0xe0   :  { %v100_v12 = vpop.f32.mrb[0].mxu0 }
  0xe1   :  { %v101_v13 = vadd.f32 %v262_v11, %v100_v12  ;;  %v288_v14 = vpop.f32.mrb[1].mxu0 }
  0xe2   :  { %v103_v15 = vpop.f32.mrb[2].mxu0 }
  0xe3   :  { %v104_v16 = vadd.f32 %v262_v11, %v103_v15  ;;  %v289_v17 = vpop.f32.mrb[3].mxu0  ;;  %v107_v18 = vmax.f32 %v101_v13, 0.0 }
  0xe5   :  { %v108_v19 = vmax.f32 %v104_v16, 0.0 }
  0xe7   :  { %v111_v20 = vpack.c.bf16 %v108_v19, %v107_v18 }
  0xe9   :  { %299 = vmatmul.mubr.msk.bf16.vlgmr.msra.gmra.mrb[0].mxu1 %vm144_vm2, %v111_v20 }
 0x1bc   :  { %v182_v22 = vpop.f32.mrb[0].mxu1 }
 0x1bd   :  { %v189_v24 = vadd.f32 %v182_v22, %v109_v21  ;;  %v300_v25 = vpop.f32.mrb[1].mxu1 }
 0x1be   :  { %v185_v26 = vpop.f32.mrb[2].mxu1 }
 0x1bf   :  { %191 = vst.msk [vmem:[#allocation2] sm:$0xff] %vm31_vm0, %v189_v24  ;;  %v190_v27 = vadd.f32 %v185_v26, %v110_v23  ;;  %v301_v28 = vpop.f32.mrb[3].mxu1 }
 0x1c1   :  { %192 = vst.msk [vmem:[#allocation2 + $0x8] sm:$0xff] %vm31_vm0, %v190_v27 }
 0x1c6   :  { %v198_v29 = vld [vmem:[#allocation2] sm:$0xff] }
 0x1c7   :  { %v200_v31 = vadd.f32 %v198_v29, %v34_v3 }
 0x1c8   :  { %v199_v32 = vld [vmem:[#allocation2 + $0x8] sm:$0xff] }
 0x1c9   :  { %v209_v33 = vadd.f32 %v271_v30, %v200_v31  ;;  %v201_v34 = vadd.f32 %v199_v32, %v35_v4 }
 0x1cb   :  { %v211_v35 = vsel %vm31_vm0, %v209_v33, 0.0  ;;  %v210_v36 = vadd.f32 %v271_v30, %v201_v34 }
 0x1cc   :  { %212 = vadd.xlane.f32.xlu0 %v211_v35 }
 0x1cd   :  { %v214_v37 = vsel %vm31_vm0, %v210_v36, 0.0 }
 0x1d0   :  { %215 = vadd.xlane.f32.xlu0 %v214_v37 }
 0x259   :  { %v213_v38 = vpop.xlane.xlu0 %212 }
 0x25a   :  { %v218_v39 = vmul.f32 0.03125, %v213_v38 }
 0x25c   :  { %v220_v40 = vsub.f32 %v209_v33, %v218_v39 }
 0x25d   :  { %v216_v41 = vpop.xlane.xlu0 %215 }
 0x25e   :  { %v219_v42 = vmul.f32 0.03125, %v216_v41  ;;  %v222_v43 = vmul.f32 %v220_v40, %v220_v40 }
 0x260   :  { %v221_v44 = vsub.f32 %v210_v36, %v219_v42  ;;  %v224_v45 = vsel %vm31_vm0, %v222_v43, 0.0 }
 0x261   :  { %225 = vadd.xlane.f32.xlu1 %v224_v45 }
 0x262   :  { %v223_v46 = vmul.f32 %v221_v44, %v221_v44 }
 0x264   :  { %v227_v47 = vsel %vm31_vm0, %v223_v46, 0.0 }
 0x265   :  { %228 = vadd.xlane.f32.xlu1 %v227_v47 }
 0x2ee   :  { %v226_v48 = vpop.xlane.xlu1 %225 }
 0x2ef   :  { %v230_v49 = vmul.f32 0.03125, %v226_v48 }
 0x2f1   :  { %v232_v50 = vadd.f32 1e-05, %v230_v49 }
 0x2f2   :  { %v229_v51 = vpop.xlane.xlu1 %228 }
 0x2f3   :  { %310 = vrsqrt.f32 %v232_v50  ;;  %v231_v52 = vmul.f32 0.03125, %v229_v51 }
 0x2f5   :  { %v233_v53 = vadd.f32 1e-05, %v231_v52 }
 0x2f7   :  { %312 = vrsqrt.f32 %v233_v53 }
 0x2fd   :  { %v311_v54 = vpop.eup %310 }
 0x2fe   :  { %v236_v56 = vmul.f32 %v311_v54, %v220_v40 }
 0x300   :  { %v245_v58 = vmul.f32 %v272_v55, %v236_v56 }
 0x301   :  { %v313_v59 = vpop.eup %312 }
 0x302   :  { %v254_v60 = vadd.f32 %v273_v57, %v245_v58  ;;  %v237_v61 = vmul.f32 %v313_v59, %v221_v44 }
 0x304   :  { %256 = vst.msk [vmem:[%s417_s7] sm:$0xff] %vm31_vm0, %v254_v60  ;;  %v246_v62 = vmul.f32 %v272_v55, %v237_v61 }
 0x306   :  { %v255_v63 = vadd.f32 %v273_v57, %v246_v62 }
 0x308   :  { %257 = vst.msk [vmem:[%s417_s7 + $0x8] sm:$0xff] %vm31_vm0, %v255_v63 }

// kernel: decoder_only_transformer_forward.5
= control target key start
LH: loop header
LB: loop body
LE: loop exit
PB: predicated region body
PF: predicated region fallthrough
CT: control target
= control target key end

     0   :  { %vm46_vm0 = vcmask 261120   ;;  %v1622_v0 = vmov 0.0   ;;  %vm1623_vm1 = vmmov 0   ;;  %vm287_vm2 = vcmask 64512   ;;  %s1626_s23 = smov 104   ;;  %s1627_s24 = smov 8   ;;  %s1995_s3 = inlined_call_operand.vmem [shape: bf16[32,32], index: 3, kind: input, shape index: {}]   ;;  %s1996_s2 = inlined_call_operand.vmem [shape: bf16[32,32], index: 2, kind: input, shape index: {}]   ;;  %s1997_s0 = inlined_call_operand.vmem [shape: f32[2,8,32], index: 0, kind: input, shape index: {}]   ;;  %s1998_s4 = inlined_call_operand.vmem [shape: bf16[32,32], index: 4, kind: input, shape index: {}]   ;;  %s1999_s6 = inlined_call_operand.vmem [shape: f32[1,32], index: 6, kind: input, shape index: {}]   ;;  %s2000_s5 = inlined_call_operand.vmem [shape: f32[1,32], index: 5, kind: input, shape index: {}]   ;;  %s2001_s7 = inlined_call_operand.vmem [shape: f32[1,32], index: 7, kind: input, shape index: {}]   ;;  %s2002_s1 = inlined_call_operand.vmem [shape: f32[2,1,8], index: 1, kind: input, shape index: {}]   ;;  %s2003_s8 = inlined_call_operand.vmem [shape: bf16[32,32], index: 8, kind: input, shape index: {}]   ;;  %s2004_s9 = inlined_call_operand.vmem [shape: f32[1,32], index: 9, kind: input, shape index: {}]   ;;  %s2005_s10 = inlined_call_operand.vmem [shape: f32[1,32], index: 10, kind: input, shape index: {}]   ;;  %s2006_s11 = inlined_call_operand.vmem [shape: f32[1,32], index: 11, kind: input, shape index: {}]   ;;  %s2007_s12 = inlined_call_operand.vmem [shape: f32[2,8,32], index: 12, kind: output, shape index: {}]  }
   0x1   :  { %1435 = vmatprep.subr.bf16.mxu1 %v1622_v0  ;;  %v1578_v1 = vld [vmem:[%s1995_s3] sm:$0xff]   ;;  %1427 = vmatprep.subr.bf16.mxu0 %v1622_v0  ;;  %47 = vst.msk [vmem:[#allocation2] sm:$0xff] %vm46_vm0, %v1622_v0  ;;  %48 = vst.msk [vmem:[#allocation2 + $0x8] sm:$0xff] %vm46_vm0, %v1622_v0  ;;  %v1579_v2 = vld [vmem:[%s1995_s3 + $0x8] sm:$0xff]   ;;  %vm411_vm3 = vcmask 1043456   ;;  %v268_v42 = vlaneseq  ;;  %s1628_s25 = smov 16  }
   0x2   :  { %1439 = vmatprep.mubr.msk.bf16.mxu1 %vm1623_vm1, %v1622_v0  ;;  %1431 = vmatprep.mubr.msk.bf16.mxu0 %vm1623_vm1, %v1622_v0  ;;  %v1580_v3 = vld [vmem:[%s1996_s2] sm:$0xff]   ;;  %v1723_v5 = vld [vmem:[%s1997_s0 + $0x8] sm:$0xff]  ;;  %s1629_s29 = smov 24   ;;  %vm1193_vm5 = vcmask 130048   ;;  %vm1196_vm6 = vcmask 195584  }
   0x3   :  { %1436 = vmatpush3.bf16.msra.mxu1 %v1578_v1  ;;  %v1718_v4 = vld [vmem:[%s1997_s0] sm:$0xff]  ;;  %1428 = vmatpush3.bf16.msra.mxu0 %v1580_v3  ;;  %v1581_v7 = vld [vmem:[%s1996_s2 + $0x8] sm:$0xff]   ;;  %v269_v43 = vshrl.u32 %v268_v42, 7  ;;  %v271_v44 = vand.u32 127, %v268_v42 }
   0x4   :  { %1437 = vmatprep.subr.bf16.mxu1 %v1622_v0  ;;  %v51_v6 = vpack.c.bf16 %v1723_v5, %v1718_v4  ;;  %1429 = vmatprep.subr.bf16.mxu0 %v1622_v0  ;;  %v1582_v8 = vld [vmem:[%s1998_s4] sm:$0xff]   ;;  %v1583_v10 = vld [vmem:[%s1998_s4 + $0x8] sm:$0xff]  }
   0x5   :  { %v1341_v11 = vld [vmem:[%s1999_s6] ss:$0 sm:$0xff]  ;;  %s1624_s6 = smov 120   ;;  %v1802_v47 = vld [vmem:[%s2002_s1 + $0x1] ss:$0 sm:$0xff]  ;;  %vm1804_vm4 = vcmp.ge.s32.totalorder %v269_v43, %v271_v44 }
   0x6   :  { %52 = vst.msk [vmem:[#allocation3] sm:$0xff] %vm46_vm0, %v51_v6  ;;  %v1335_v18 = vld [vmem:[%s2000_s5] ss:$0 sm:$0xff] }
   0x7   :  { %1438 = vmatpush3.bf16.msra.mxu1 %v1579_v2  ;;  %1430 = vmatpush3.bf16.msra.mxu0 %v1581_v7  ;;  %v1347_v35 = vld [vmem:[%s2001_s7] ss:$0 sm:$0xff] }
   0x8   :  { %1451 = vmatprep.subr.bf16.mxu1 %v1622_v0  ;;  %1443 = vmatprep.subr.bf16.mxu0 %v1622_v0  ;;  %v1797_v45 = vld [vmem:[%s2002_s1] ss:$0 sm:$0xff]  ;;  %s1625_s1 = smov 112  }
   0xd   :  { %v53_v9 = vld [vmem:[#allocation3] sm:$0xff] }
   0xe   :  { %1440 = vmatmul.mubr.msk.bf16.vlgmr.msra.gmra.mrb[0].mxu1 %vm46_vm0, %v53_v9  ;;  %1432 = vmatmul.mubr.msk.bf16.vlgmr.msra.gmra.mrb[0].mxu0 %vm46_vm0, %v53_v9 }
   0xf   :  { %1444 = vmatpush3.bf16.msra.mxu0 %v1582_v8  ;;  %1447 = vmatprep.mubr.msk.bf16.mxu0 %vm1623_vm1, %v1622_v0 }
  0x10   :  { %1445 = vmatprep.subr.bf16.mxu0 %v1622_v0  ;;  %1453 = vmatprep.mubr.msk.bf16.mxu1 %vm1623_vm1, %v1622_v0 }
  0x13   :  { %1446 = vmatpush3.bf16.msra.mxu0 %v1583_v10 }
  0x14   :  { %1457 = vmatprep.subr.bf16.mxu0 %v1622_v0 }
  0x16   :  { %1448 = vmatmul.mubr.msk.bf16.vlgmr.msra.gmra.mrb[4].mxu0 %vm46_vm0, %v53_v9 }
  0x17   :  { %1459 = vmatprep.mubr.msk.bf16.mxu0 %vm1623_vm1, %v1622_v0 }
  0xe1   :  { %v185_v12 = vpop.f32.mrb[0].mxu1  ;;  %v115_v13 = vpop.f32.mrb[0].mxu0 }
  0xe2   :  { %v186_v14 = vadd.f32 %v1341_v11, %v185_v12  ;;  %v1441_v15 = vpop.f32.mrb[1].mxu1  ;;  %v1433_v16 = vpop.f32.mrb[1].mxu0  ;;  %v116_v25 = vadd.f32 %v1335_v18, %v115_v13 }
  0xe3   :  { %v188_v17 = vpop.f32.mrb[2].mxu1  ;;  %v118_v19 = vpop.f32.mrb[2].mxu0 }
  0xe4   :  { %v1757_v20 = vpack.c.bf16 %v186_v14, %v186_v14  ;;  %v189_v21 = vadd.f32 %v1341_v11, %v188_v17  ;;  %v1442_v22 = vpop.f32.mrb[3].mxu1  ;;  %v1434_v23 = vpop.f32.mrb[3].mxu0  ;;  %v1768_v29 = vpack.c.bf16 %v116_v25, %v116_v25  ;;  %v119_v30 = vadd.f32 %v1335_v18, %v118_v19 }
  0xe6   :  { %v1759_v24 = vpack.c.bf16 %v189_v21, %v189_v21  ;;  %v292_v26 = vsel %vm287_vm2, %v1757_v20, 0  ;;  %v1771_v34 = vpack.c.bf16 %v119_v30, %v119_v30 }
  0xe7   :  { %1452 = vmatpush3.bf16.xpose.msra.mxu1 %v292_v26 }
  0xe8   :  { %553 = vrot.lane.b32.xlu1 %v1759_v24, %s1624_s6  ;;  %v338_v27 = vsel %vm287_vm2, %v1759_v24, 0  ;;  %1463 = vmatprep.subr.bf16.mxu1 %v1622_v0 }
  0xe9   :  { %1458 = vmatpush3.bf16.xpose.msra.mxu0 %v338_v27  ;;  %v255_v28 = vpop.f32.mrb[4].mxu0 }
  0xea   :  { %v1449_v31 = vpop.f32.mrb[5].mxu0  ;;  %1469 = vmatprep.subr.bf16.mxu0 %v1622_v0  ;;  %v256_v36 = vadd.f32 %v1347_v35, %v255_v28 }
  0xeb   :  { %v258_v32 = vpop.f32.mrb[6].mxu0 }
  0xec   :  { %v1450_v33 = vpop.f32.mrb[7].mxu0  ;;  %v259_v37 = vadd.f32 %v1347_v35, %v258_v32  ;;  %v1784_v38 = vpack.c.bf16 %v256_v36, %v256_v36 }
  0xee   :  { %1454 = vmatmul.mubr.msk.bf16.vlgmr.msra.gmra.mrb[4].mxu1 %vm287_vm2, %v1768_v29  ;;  %v1786_v39 = vpack.c.bf16 %v259_v37, %v259_v37  ;;  %v413_v40 = vsel %vm411_vm3, %v1784_v38, 0 }
  0xef   :  { %1465 = vmatprep.mubr.msk.bf16.mxu1 %vm1623_vm1, %v1622_v0  ;;  %1464 = vmatpush3.bf16.msra.mxu1 %v413_v40 }
  0xf0   :  { %1460 = vmatmul.mubr.msk.bf16.vlgmr.msra.gmra.mrb[8].mxu0 %vm287_vm2, %v1771_v34  ;;  %v459_v41 = vsel %vm411_vm3, %v1786_v39, 0  ;;  %1475 = vmatprep.subr.bf16.mxu1 %v1622_v0 }
  0xf1   :  { %1471 = vmatprep.mubr.msk.bf16.mxu0 %vm1623_vm1, %v1622_v0  ;;  %1470 = vmatpush3.bf16.msra.mxu0 %v459_v41 }
  0xf2   :  { %1481 = vmatprep.subr.bf16.mxu0 %v1622_v0 }
 0x15a   :  { %v554_v11 = vpop.permute.xlu1 %553 }
 0x15b   :  { %v559_v23 = vsel %vm287_vm2, %v554_v11, 0 }
 0x1c1   :  { %v328_v46 = vpop.f32.mrb[4].mxu1 }
 0x1c2   :  { %v329_v49 = vadd.f32 %v1797_v45, %v328_v46  ;;  %v1455_v50 = vpop.f32.mrb[5].mxu1 }
 0x1c3   :  { %v331_v51 = vpop.f32.mrb[6].mxu1  ;;  %v374_v52 = vpop.f32.mrb[8].mxu0 }
 0x1c4   :  { %v375_v53 = vadd.f32 %v1802_v47, %v374_v52  ;;  %v1456_v54 = vpop.f32.mrb[7].mxu1  ;;  %v1461_v55 = vpop.f32.mrb[9].mxu0  ;;  %v382_v56 = vsel %vm1804_vm4, %v329_v49, -1e+30 }
 0x1c5   :  { %v377_v57 = vpop.f32.mrb[10].mxu0  ;;  %v384_v58 = vsel %vm287_vm2, %v382_v56, -inf }
 0x1c6   :  { %385 = vmax.xlane.f32.xlu0 %v384_v58  ;;  %v1462_v59 = vpop.f32.mrb[11].mxu0  ;;  %v383_v60 = vsel %vm1804_vm4, %v375_v53, -1e+30 }
 0x1c7   :  { %v387_v61 = vsel %vm287_vm2, %v383_v60, -inf }
 0x1ca   :  { %388 = vmax.xlane.f32.xlu0 %v387_v61 }
 0x1e0   :  { %503 = vrot.lane.b32.xlu0 %v1757_v20, %s1624_s6 }
 0x253   :  { %v386_v62 = vpop.xlane.xlu0 %385 }
 0x254   :  { %v390_v63 = vsub.f32 %v382_v56, %v386_v62 }
 0x256   :  { %v392_v1 = vmul.f32 1.442695, %v390_v63 }
 0x257   :  { %v389_v2 = vpop.xlane.xlu0 %388 }
 0x258   :  { %1586 = vpow2.f32 %v392_v1  ;;  %v391_v3 = vsub.f32 %v383_v60, %v389_v2 }
 0x25a   :  { %v394_v6 = vmul.f32 1.442695, %v391_v3 }
 0x25b   :  { %v504_v16 = vpop.permute.xlu0 %503 }
 0x25c   :  { %1588 = vpow2.f32 %v394_v6  ;;  %v509_v19 = vsel %vm287_vm2, %v504_v16, 0 }
 0x262   :  { %v1587_v7 = vpop.eup %1586 }
 0x263   :  { %v396_v8 = vsel %vm287_vm2, %v1587_v7, 0.0 }
 0x264   :  { %397 = vadd.xlane.f32.xlu1 %v396_v8 }
 0x266   :  { %v1589_v9 = vpop.eup %1588 }
 0x267   :  { %v399_v10 = vsel %vm287_vm2, %v1589_v9, 0.0 }
 0x268   :  { %400 = vadd.xlane.f32.xlu1 %v399_v10 }
 0x279   :  { %501 = vrot.lane.b32.xlu1 %v1768_v29, %s1624_s6 }
 0x27d   :  { %551 = vrot.lane.b32.xlu1 %v1771_v34, %s1624_s6 }
 0x2f1   :  { %v398_v12 = vpop.xlane.xlu1 %397 }
 0x2f2   :  { %1590 = vrcp.f32 %v398_v12 }
 0x2f5   :  { %v401_v13 = vpop.xlane.xlu1 %400 }
 0x2f6   :  { %1592 = vrcp.f32 %v401_v13 }
 0x2f9   :  { %v502_v25 = vpop.permute.xlu1 %501 }
 0x2fc   :  { %v1591_v14 = vpop.eup %1590 }
 0x2fd   :  { %v404_v15 = vmul.f32 %v1591_v14, %v1587_v7  ;;  %v552_v26 = vpop.permute.xlu1 %551 }
 0x2ff   :  { %v406_v17 = vpack.c.bf16 %v404_v15, %v404_v15 }
 0x300   :  { %v1593_v18 = vpop.eup %1592 }
 0x301   :  { %v405_v21 = vmul.f32 %v1593_v18, %v1589_v9  ;;  %1466 = vmatmul.mubr.msk.bf16.vlgmr.msra.gmra.mrb[8].mxu1 %vm287_vm2, %v406_v17 }
 0x302   :  { %1476 = vmatpush3.bf16.xpose.msra.mxu1 %v509_v19  ;;  %1477 = vmatprep.mubr.msk.bf16.mxu1 %vm1623_vm1, %v1622_v0 }
 0x303   :  { %v407_v22 = vpack.c.bf16 %v405_v21, %v405_v21  ;;  %1487 = vmatprep.subr.bf16.mxu1 %v1622_v0 }
 0x305   :  { %1472 = vmatmul.mubr.msk.bf16.vlgmr.msra.gmra.mrb[12].mxu0 %vm287_vm2, %v407_v22 }
 0x306   :  { %1482 = vmatpush3.bf16.xpose.msra.mxu0 %v559_v23  ;;  %1483 = vmatprep.mubr.msk.bf16.mxu0 %vm1623_vm1, %v1622_v0 }
 0x307   :  { %1493 = vmatprep.subr.bf16.mxu0 %v1622_v0 }
 0x309   :  { %1478 = vmatmul.mubr.msk.bf16.vlgmr.msra.gmra.mrb[12].mxu1 %vm287_vm2, %v502_v25 }
 0x30a   :  { %1489 = vmatprep.mubr.msk.bf16.mxu1 %vm1623_vm1, %v1622_v0 }
 0x30d   :  { %1484 = vmatmul.mubr.msk.bf16.vlgmr.msra.gmra.mrb[16].mxu0 %vm287_vm2, %v552_v26 }
 0x30e   :  { %1495 = vmatprep.mubr.msk.bf16.mxu0 %vm1623_vm1, %v1622_v0 }
 0x3d4   :  { %v1840_v27 = vpop.f32.mrb[8].mxu1 }
 0x3d5   :  { %v1467_v28 = vpop.f32.mrb[9].mxu1 }
 0x3d6   :  { %v452_v30 = vpop.f32.mrb[10].mxu1 }
 0x3d7   :  { %v1468_v31 = vpop.f32.mrb[11].mxu1 }
 0x3d8   :  { %v1842_v32 = vpop.f32.mrb[12].mxu0 }
 0x3d9   :  { %v1473_v33 = vpop.f32.mrb[13].mxu0 }
 0x3da   :  { %v498_v35 = vpop.f32.mrb[14].mxu0 }
 0x3db   :  { %v1474_v36 = vpop.f32.mrb[15].mxu0 }
 0x3dc   :  { %v545_v37 = vpop.f32.mrb[12].mxu1 }
 0x3dd   :  { %v546_v40 = vadd.f32 %v1797_v45, %v545_v37  ;;  %v1479_v41 = vpop.f32.mrb[13].mxu1 }
 0x3de   :  { %v548_v42 = vpop.f32.mrb[14].mxu1 }
 0x3df   :  { %v1480_v43 = vpop.f32.mrb[15].mxu1  ;;  %v601_v44 = vsel %vm1804_vm4, %v546_v40, -1e+30 }
 0x3e0   :  { %v595_v46 = vpop.f32.mrb[16].mxu0  ;;  %v603_v49 = vsel %vm287_vm2, %v601_v44, -inf }
 0x3e1   :  { %v596_v50 = vadd.f32 %v1802_v47, %v595_v46  ;;  %604 = vmax.xlane.f32.xlu0 %v603_v49  ;;  %v1485_v51 = vpop.f32.mrb[17].mxu0 }
 0x3e2   :  { %v598_v52 = vpop.f32.mrb[18].mxu0 }
 0x3e3   :  { %v1486_v53 = vpop.f32.mrb[19].mxu0  ;;  %v602_v54 = vsel %vm1804_vm4, %v596_v50, -1e+30 }
 0x3e4   :  { %v606_v55 = vsel %vm287_vm2, %v602_v54, -inf }
 0x3e5   :  { %607 = vmax.xlane.f32.xlu1 %v606_v55 }
 0x3f6   :  { %675 = vrot.lane.b32.xlu1 %v1786_v39, %s1624_s6 }
 0x3fa   :  { %725 = vrot.lane.b32.xlu1 %v1757_v20, %s1625_s1 }
 0x3fe   :  { %775 = vrot.lane.b32.xlu1 %v1759_v24, %s1625_s1 }
 0x402   :  { %773 = vrot.lane.b32.xlu1 %v1771_v34, %s1625_s1 }
 0x46e   :  { %v605_v56 = vpop.xlane.xlu0 %604 }
 0x46f   :  { %v609_v57 = vsub.f32 %v601_v44, %v605_v56 }
 0x471   :  { %v611_v58 = vmul.f32 1.442695, %v609_v57 }
 0x472   :  { %v608_v59 = vpop.xlane.xlu1 %607 }
 0x473   :  { %1594 = vpow2.f32 %v611_v58  ;;  %v610_v60 = vsub.f32 %v602_v54, %v608_v59 }
 0x475   :  { %v613_v61 = vmul.f32 1.442695, %v610_v60 }
 0x476   :  { %v676_v62 = vpop.permute.xlu1 %675 }
 0x477   :  { %1596 = vpow2.f32 %v613_v61  ;;  %v681_v63 = vsel %vm411_vm3, %v676_v62, 0 }
 0x478   :  { %1494 = vmatpush3.bf16.msra.mxu0 %v681_v63 }
 0x479   :  { %1505 = vmatprep.subr.bf16.mxu0 %v1622_v0 }
 0x47a   :  { %v726_v12 = vpop.permute.xlu1 %725 }
 0x47b   :  { %v731_v18 = vsel %vm287_vm2, %v726_v12, 0 }
 0x47d   :  { %v1595_v1 = vpop.eup %1594 }
 0x47e   :  { %v615_v2 = vsel %vm287_vm2, %v1595_v1, 0.0  ;;  %v776_v17 = vpop.permute.xlu1 %775 }
 0x47f   :  { %616 = vadd.xlane.f32.xlu0 %v615_v2  ;;  %v781_v21 = vsel %vm287_vm2, %v776_v17, 0 }
 0x481   :  { %v1597_v3 = vpop.eup %1596 }
 0x482   :  { %v618_v6 = vsel %vm287_vm2, %v1597_v3, 0.0  ;;  %v774_v23 = vpop.permute.xlu1 %773 }
 0x483   :  { %619 = vadd.xlane.f32.xlu0 %v618_v6 }
 0x499   :  { %627 = vrot.lane.b32.xlu0 %v1784_v38, %s1624_s6 }
 0x49d   :  { %723 = vrot.lane.b32.xlu0 %v1768_v29, %s1625_s1 }
 0x50c   :  { %v617_v7 = vpop.xlane.xlu0 %616 }
 0x50d   :  { %1598 = vrcp.f32 %v617_v7 }
 0x510   :  { %v620_v8 = vpop.xlane.xlu0 %619 }
 0x511   :  { %1600 = vrcp.f32 %v620_v8 }
 0x514   :  { %v628_v9 = vpop.permute.xlu0 %627 }
 0x515   :  { %v633_v10 = vsel %vm411_vm3, %v628_v9, 0 }
 0x516   :  { %1488 = vmatpush3.bf16.msra.mxu1 %v633_v10 }
 0x517   :  { %v1599_v11 = vpop.eup %1598  ;;  %1499 = vmatprep.subr.bf16.mxu1 %v1622_v0 }
 0x518   :  { %v623_v13 = vmul.f32 %v1599_v11, %v1595_v1  ;;  %v724_v22 = vpop.permute.xlu0 %723 }
 0x51a   :  { %v625_v14 = vpack.c.bf16 %v623_v13, %v623_v13 }
 0x51b   :  { %v1601_v15 = vpop.eup %1600 }
 0x51c   :  { %v624_v16 = vmul.f32 %v1601_v15, %v1597_v3  ;;  %1490 = vmatmul.mubr.msk.bf16.vlgmr.msra.gmra.mrb[16].mxu1 %vm287_vm2, %v625_v14 }
 0x51d   :  { %1501 = vmatprep.mubr.msk.bf16.mxu1 %vm1623_vm1, %v1622_v0 }
 0x51e   :  { %v626_v19 = vpack.c.bf16 %v624_v16, %v624_v16 }
 0x51f   :  { %1500 = vmatpush3.bf16.xpose.msra.mxu1 %v731_v18 }
 0x520   :  { %1496 = vmatmul.mubr.msk.bf16.vlgmr.msra.gmra.mrb[20].mxu0 %vm287_vm2, %v626_v19  ;;  %1511 = vmatprep.subr.bf16.mxu1 %v1622_v0 }
 0x521   :  { %1506 = vmatpush3.bf16.xpose.msra.mxu0 %v781_v21  ;;  %1507 = vmatprep.mubr.msk.bf16.mxu0 %vm1623_vm1, %v1622_v0 }
 0x522   :  { %1517 = vmatprep.subr.bf16.mxu0 %v1622_v0 }
 0x526   :  { %1502 = vmatmul.mubr.msk.bf16.vlgmr.msra.gmra.mrb[20].mxu1 %vm287_vm2, %v724_v22 }
 0x527   :  { %1513 = vmatprep.mubr.msk.bf16.mxu1 %vm1623_vm1, %v1622_v0 }
 0x528   :  { %1508 = vmatmul.mubr.msk.bf16.vlgmr.msra.gmra.mrb[24].mxu0 %vm287_vm2, %v774_v23 }
 0x529   :  { %1519 = vmatprep.mubr.msk.bf16.mxu0 %vm1623_vm1, %v1622_v0 }
 0x5ef   :  { %v1886_v25 = vpop.f32.mrb[16].mxu1 }
 0x5f0   :  { %v1491_v26 = vpop.f32.mrb[17].mxu1 }
 0x5f1   :  { %v672_v28 = vpop.f32.mrb[18].mxu1 }
 0x5f2   :  { %v1492_v30 = vpop.f32.mrb[19].mxu1 }
 0x5f3   :  { %v1888_v31 = vpop.f32.mrb[20].mxu0 }
 0x5f4   :  { %v1563_v33 = vpack.i.bf16 %v1888_v31, %v1886_v25  ;;  %v1497_v35 = vpop.f32.mrb[21].mxu0 }
 0x5f5   :  { %v720_v36 = vpop.f32.mrb[22].mxu0 }
 0x5f6   :  { %v1498_v37 = vpop.f32.mrb[23].mxu0 }
 0x5f9   :  { %v767_v40 = vpop.f32.mrb[20].mxu1 }
 0x5fa   :  { %v768_v41 = vadd.f32 %v1797_v45, %v767_v40  ;;  %v1503_v42 = vpop.f32.mrb[21].mxu1 }
 0x5fb   :  { %v770_v43 = vpop.f32.mrb[22].mxu1  ;;  %v817_v44 = vpop.f32.mrb[24].mxu0 }
 0x5fc   :  { %v818_v46 = vadd.f32 %v1802_v47, %v817_v44  ;;  %v1504_v49 = vpop.f32.mrb[23].mxu1  ;;  %v1509_v50 = vpop.f32.mrb[25].mxu0  ;;  %v823_v51 = vsel %vm1804_vm4, %v768_v41, -1e+30 }
 0x5fd   :  { %v820_v52 = vpop.f32.mrb[26].mxu0  ;;  %v825_v53 = vsel %vm287_vm2, %v823_v51, -inf }
 0x5fe   :  { %826 = vmax.xlane.f32.xlu0 %v825_v53  ;;  %v1510_v54 = vpop.f32.mrb[27].mxu0  ;;  %v824_v55 = vsel %vm1804_vm4, %v818_v46, -1e+30 }
 0x5ff   :  { %v828_v56 = vsel %vm287_vm2, %v824_v55, -inf }
 0x600   :  { %829 = vmax.xlane.f32.xlu1 %v828_v56 }
 0x611   :  { %897 = vrot.lane.b32.xlu1 %v1786_v39, %s1625_s1 }
 0x615   :  { %947 = vrot.lane.b32.xlu1 %v1757_v20, %s1626_s23 }
 0x619   :  { %997 = vrot.lane.b32.xlu1 %v1759_v24, %s1626_s23 }
 0x61d   :  { %995 = vrot.lane.b32.xlu1 %v1771_v34, %s1626_s23 }
 0x68b   :  { %v827_v57 = vpop.xlane.xlu0 %826 }
 0x68c   :  { %v831_v58 = vsub.f32 %v823_v51, %v827_v57 }
 0x68d   :  { %v830_v59 = vpop.xlane.xlu1 %829 }
 0x68e   :  { %v833_v60 = vmul.f32 1.442695, %v831_v58  ;;  %v832_v61 = vsub.f32 %v824_v55, %v830_v59 }
 0x690   :  { %1602 = vpow2.f32 %v833_v60  ;;  %v835_v62 = vmul.f32 1.442695, %v832_v61 }
 0x691   :  { %v898_v63 = vpop.permute.xlu1 %897 }
 0x692   :  { %1604 = vpow2.f32 %v835_v62  ;;  %v903_v1 = vsel %vm411_vm3, %v898_v63, 0 }
 0x693   :  { %1518 = vmatpush3.bf16.msra.mxu0 %v903_v1 }
 0x694   :  { %1529 = vmatprep.subr.bf16.mxu0 %v1622_v0 }
 0x695   :  { %v948_v10 = vpop.permute.xlu1 %947 }
 0x699   :  { %v998_v15 = vpop.permute.xlu1 %997 }
 0x69a   :  { %v1603_v20 = vpop.eup %1602  ;;  %v1003_v17 = vsel %vm287_vm2, %v998_v15, 0 }
 0x69b   :  { %v837_v24 = vsel %vm287_vm2, %v1603_v20, 0.0 }
 0x69c   :  { %v1605_v2 = vpop.eup %1604  ;;  %838 = vadd.xlane.f32.xlu0 %v837_v24 }
 0x69d   :  { %v840_v34 = vsel %vm287_vm2, %v1605_v2, 0.0  ;;  %v996_v19 = vpop.permute.xlu1 %995 }
 0x6a0   :  { %841 = vadd.xlane.f32.xlu0 %v840_v34 }
 0x6b6   :  { %849 = vrot.lane.b32.xlu0 %v1784_v38, %s1625_s1 }
 0x6ba   :  { %945 = vrot.lane.b32.xlu0 %v1768_v29, %s1626_s23  ;;  %v953_v29 = vsel %vm287_vm2, %v948_v10, 0 }
 0x729   :  { %v839_v3 = vpop.xlane.xlu0 %838 }
 0x72a   :  { %1606 = vrcp.f32 %v839_v3 }
 0x72d   :  { %v842_v6 = vpop.xlane.xlu0 %841 }
 0x72e   :  { %1608 = vrcp.f32 %v842_v6 }
 0x731   :  { %v850_v7 = vpop.permute.xlu0 %849 }
 0x732   :  { %v855_v8 = vsel %vm411_vm3, %v850_v7, 0  ;;  %v1584_v7 = vld [vmem:[%s2003_s8] sm:$0xff]  }
 0x733   :  { %1512 = vmatpush3.bf16.msra.mxu1 %v855_v8  ;;  %v1585_v8 = vld [vmem:[%s2003_s8 + $0x8] sm:$0xff]  }
 0x734   :  { %v1607_v9 = vpop.eup %1606  ;;  %1523 = vmatprep.subr.bf16.mxu1 %v1622_v0 }
 0x735   :  { %v845_v11 = vmul.f32 %v1607_v9, %v1603_v20  ;;  %v946_v18 = vpop.permute.xlu0 %945 }
 0x737   :  { %v847_v12 = vpack.c.bf16 %v845_v11, %v845_v11 }
 0x738   :  { %v1609_v13 = vpop.eup %1608 }
 0x739   :  { %v846_v14 = vmul.f32 %v1609_v13, %v1605_v2  ;;  %1514 = vmatmul.mubr.msk.bf16.vlgmr.msra.gmra.mrb[24].mxu1 %vm287_vm2, %v847_v12 }
 0x73a   :  { %1525 = vmatprep.mubr.msk.bf16.mxu1 %vm1623_vm1, %v1622_v0 }
 0x73b   :  { %v848_v16 = vpack.c.bf16 %v846_v14, %v846_v14 }
 0x73c   :  { %1524 = vmatpush3.bf16.xpose.msra.mxu1 %v953_v29 }
 0x73d   :  { %1520 = vmatmul.mubr.msk.bf16.vlgmr.msra.gmra.mrb[28].mxu0 %vm287_vm2, %v848_v16  ;;  %1535 = vmatprep.subr.bf16.mxu1 %v1622_v0 }
 0x73e   :  { %1530 = vmatpush3.bf16.xpose.msra.mxu0 %v1003_v17  ;;  %1531 = vmatprep.mubr.msk.bf16.mxu0 %vm1623_vm1, %v1622_v0 }
 0x73f   :  { %1541 = vmatprep.subr.bf16.mxu0 %v1622_v0 }
 0x743   :  { %1526 = vmatmul.mubr.msk.bf16.vlgmr.msra.gmra.mrb[28].mxu1 %vm287_vm2, %v946_v18 }
 0x744   :  { %1537 = vmatprep.mubr.msk.bf16.mxu1 %vm1623_vm1, %v1622_v0 }
 0x745   :  { %1532 = vmatmul.mubr.msk.bf16.vlgmr.msra.gmra.mrb[32].mxu0 %vm287_vm2, %v996_v19 }
 0x746   :  { %1543 = vmatprep.mubr.msk.bf16.mxu0 %vm1623_vm1, %v1622_v0 }
 0x80c   :  { %v891_v21 = vpop.f32.mrb[24].mxu1 }
 0x80d   :  { %v1515_v22 = vpop.f32.mrb[25].mxu1 }
 0x80e   :  { %v894_v23 = vpop.f32.mrb[26].mxu1 }
 0x80f   :  { %v1516_v26 = vpop.f32.mrb[27].mxu1 }
 0x810   :  { %v939_v28 = vpop.f32.mrb[28].mxu0 }
 0x811   :  { %v1568_v30 = vpack.i.bf16 %v939_v28, %v891_v21  ;;  %v1521_v35 = vpop.f32.mrb[29].mxu0 }
 0x812   :  { %v942_v36 = vpop.f32.mrb[30].mxu0 }
 0x813   :  { %v1522_v37 = vpop.f32.mrb[31].mxu0 }
 0x816   :  { %v989_v40 = vpop.f32.mrb[28].mxu1 }
 0x817   :  { %v990_v41 = vadd.f32 %v1797_v45, %v989_v40  ;;  %v1527_v42 = vpop.f32.mrb[29].mxu1 }
 0x818   :  { %v992_v43 = vpop.f32.mrb[30].mxu1  ;;  %v1039_v44 = vpop.f32.mrb[32].mxu0 }
 0x819   :  { %v1040_v46 = vadd.f32 %v1802_v47, %v1039_v44  ;;  %v1528_v49 = vpop.f32.mrb[31].mxu1  ;;  %v1533_v50 = vpop.f32.mrb[33].mxu0  ;;  %v1045_v51 = vsel %vm1804_vm4, %v990_v41, -1e+30  ;;  %v1200_v43 = vld [vmem:[#allocation2] sm:$0xff] }
 0x81a   :  { %v1042_v52 = vpop.f32.mrb[34].mxu0  ;;  %v1047_v53 = vsel %vm287_vm2, %v1045_v51, -inf }
 0x81b   :  { %1048 = vmax.xlane.f32.xlu0 %v1047_v53  ;;  %v1534_v54 = vpop.f32.mrb[35].mxu0  ;;  %v1046_v55 = vsel %vm1804_vm4, %v1040_v46, -1e+30  ;;  %v1201_v46 = vld [vmem:[#allocation2 + $0x8] sm:$0xff]  ;;  %v1374_v53 = vld [vmem:[%s2004_s9] ss:$0 sm:$0xff] }
 0x81c   :  { %v1050_v45 = vsel %vm287_vm2, %v1046_v55, -inf }
 0x81d   :  { %1051 = vmax.xlane.f32.xlu1 %v1050_v45 }
 0x82e   :  { %1119 = vrot.lane.b32.xlu1 %v1786_v39, %s1626_s23 }
 0x832   :  { %1564 = vrot.lane.b32.xlu1 %v1563_v33, %s1627_s24 }
 0x836   :  { %1569 = vrot.lane.b32.xlu1 %v1568_v30, %s1628_s25 }
 0x8a8   :  { %v1049_v47 = vpop.xlane.xlu0 %1048 }
 0x8a9   :  { %v1053_v56 = vsub.f32 %v1045_v51, %v1049_v47 }
 0x8aa   :  { %v1052_v57 = vpop.xlane.xlu1 %1051 }
 0x8ab   :  { %v1055_v58 = vmul.f32 1.442695, %v1053_v56  ;;  %v1054_v59 = vsub.f32 %v1046_v55, %v1052_v57 }
 0x8ad   :  { %1610 = vpow2.f32 %v1055_v58  ;;  %v1057_v48 = vmul.f32 1.442695, %v1054_v59 }
 0x8ae   :  { %v1120_v60 = vpop.permute.xlu1 %1119 }
 0x8af   :  { %1612 = vpow2.f32 %v1057_v48  ;;  %v1125_v61 = vsel %vm411_vm3, %v1120_v60, 0 }
 0x8b0   :  { %1542 = vmatpush3.bf16.msra.mxu0 %v1125_v61 }
 0x8b2   :  { %v1565_v17 = vpop.permute.xlu1 %1564 }
 0x8b3   :  { %v1567_v19 = vunpack.i.h.bf16 %v1565_v17 }
 0x8b5   :  { %v1192_v26 = vsel %vm287_vm2, %v1842_v32, %v1567_v19 }
 0x8b6   :  { %v1570_v18 = vpop.permute.xlu1 %1569 }
 0x8b7   :  { %v1611_v39 = vpop.eup %1610  ;;  %v1572_v21 = vunpack.i.h.bf16 %v1570_v18  ;;  %v1571_v22 = vunpack.i.l.bf16 %v1570_v18 }
 0x8b8   :  { %v1059_v62 = vsel %vm287_vm2, %v1611_v39, 0.0 }
 0x8b9   :  { %v1613_v63 = vpop.eup %1612  ;;  %1060 = vadd.xlane.f32.xlu0 %v1059_v62  ;;  %v1195_v37 = vsel %vm1193_vm5, %v1192_v26, %v1572_v21 }
 0x8ba   :  { %v1062_v25 = vsel %vm287_vm2, %v1613_v63, 0.0 }
 0x8bd   :  { %1063 = vadd.xlane.f32.xlu0 %v1062_v25 }
 0x8d3   :  { %1071 = vrot.lane.b32.xlu0 %v1784_v38, %s1626_s23 }
 0x946   :  { %v1061_v31 = vpop.xlane.xlu0 %1060 }
 0x947   :  { %1614 = vrcp.f32 %v1061_v31 }
 0x94a   :  { %v1064_v33 = vpop.xlane.xlu0 %1063 }
 0x94b   :  { %1616 = vrcp.f32 %v1064_v33 }
 0x94e   :  { %v1072_v1 = vpop.permute.xlu0 %1071 }
 0x94f   :  { %v1077_v20 = vsel %vm411_vm3, %v1072_v1, 0 }
 0x950   :  { %1536 = vmatpush3.bf16.msra.mxu1 %v1077_v20 }
 0x951   :  { %v1615_v24 = vpop.eup %1614  ;;  %1547 = vmatprep.subr.bf16.mxu1 %v1622_v0 }
 0x952   :  { %v1067_v2 = vmul.f32 %v1615_v24, %v1611_v39 }
 0x954   :  { %v1069_v34 = vpack.c.bf16 %v1067_v2, %v1067_v2 }
 0x955   :  { %v1617_v3 = vpop.eup %1616 }
 0x956   :  { %v1068_v6 = vmul.f32 %v1617_v3, %v1613_v63  ;;  %1538 = vmatmul.mubr.msk.bf16.vlgmr.msra.gmra.mrb[32].mxu1 %vm287_vm2, %v1069_v34  ;;  %v1375_v3 = vld [vmem:[%s2005_s10] ss:$0 sm:$0xff] }
 0x957   :  { %1551 = vmatprep.mubr.msk.bf16.mxu1 %vm1623_vm1, %v1622_v0  ;;  %1548 = vmatpush3.bf16.msra.mxu1 %v1584_v7 }
 0x958   :  { %v1070_v38 = vpack.c.bf16 %v1068_v6, %v1068_v6  ;;  %1549 = vmatprep.subr.bf16.mxu1 %v1622_v0  ;;  %v1566_v0 = vunpack.i.l.bf16 %v1565_v17 }
 0x95a   :  { %1544 = vmatmul.mubr.msk.bf16.vlgmr.msra.gmra.mrb[36].mxu0 %vm287_vm2, %v1070_v38  ;;  %v1191_v28 = vsel %vm287_vm2, %v1840_v27, %v1566_v0  ;;  %v1376_v38 = vld [vmem:[%s2006_s11] ss:$0 sm:$0xff] }
 0x95b   :  { %1550 = vmatpush3.bf16.msra.mxu1 %v1585_v8  ;;  %v1194_v36 = vsel %vm1193_vm5, %v1191_v28, %v1571_v22 }
 0xa29   :  { %v1113_v9 = vpop.f32.mrb[32].mxu1 }
 0xa2a   :  { %v1539_v10 = vpop.f32.mrb[33].mxu1 }
 0xa2b   :  { %v1116_v11 = vpop.f32.mrb[34].mxu1 }
 0xa2c   :  { %v1540_v12 = vpop.f32.mrb[35].mxu1 }
 0xa2d   :  { %v1161_v13 = vpop.f32.mrb[36].mxu0 }
 0xa2e   :  { %v1573_v14 = vpack.i.bf16 %v1161_v13, %v1113_v9  ;;  %v1545_v15 = vpop.f32.mrb[37].mxu0 }
 0xa2f   :  { %v1164_v29 = vpop.f32.mrb[38].mxu0 }
 0xa30   :  { %1574 = vrot.lane.b32.xlu0 %v1573_v14, %s1629_s29  ;;  %v1546_v16 = vpop.f32.mrb[39].mxu0 }
 0xaa2   :  { %v1575_v23 = vpop.permute.xlu0 %1574 }
 0xaa3   :  { %v1577_v30 = vunpack.i.h.bf16 %v1575_v23  ;;  %v1576_v35 = vunpack.i.l.bf16 %v1575_v23 }
 0xaa5   :  { %v1198_v40 = vsel %vm1196_vm6, %v1195_v37, %v1577_v30  ;;  %v1197_v41 = vsel %vm1196_vm6, %v1194_v36, %v1576_v35 }
 0xaa6   :  { %v1199_v42 = vpack.c.bf16 %v1198_v40, %v1197_v41 }
 0xaa8   :  { %1552 = vmatmul.mubr.msk.bf16.vlgmr.msra.gmra.mrb[36].mxu1 %vm46_vm0, %v1199_v42 }
 0xb7b   :  { %v1255_v44 = vpop.f32.mrb[36].mxu1 }
 0xb7c   :  { %v1262_v49 = vadd.f32 %v1255_v44, %v1200_v43  ;;  %v1553_v50 = vpop.f32.mrb[37].mxu1 }
 0xb7d   :  { %v1258_v51 = vpop.f32.mrb[38].mxu1 }
 0xb7e   :  { %1264 = vst.msk [vmem:[#allocation2] sm:$0xff] %vm46_vm0, %v1262_v49  ;;  %v1263_v32 = vadd.f32 %v1258_v51, %v1201_v46  ;;  %v1554_v52 = vpop.f32.mrb[39].mxu1 }
 0xb80   :  { %1265 = vst.msk [vmem:[#allocation2 + $0x8] sm:$0xff] %vm46_vm0, %v1263_v32 }
 0xb85   :  { %v1271_v27 = vld [vmem:[#allocation2] sm:$0xff] }
 0xb86   :  { %v1273_v54 = vadd.f32 %v1271_v27, %v1718_v4 }
 0xb87   :  { %v1272_v55 = vld [vmem:[#allocation2 + $0x8] sm:$0xff] }
 0xb88   :  { %v1282_v45 = vadd.f32 %v1374_v53, %v1273_v54  ;;  %v1274_v47 = vadd.f32 %v1272_v55, %v1723_v5 }
 0xb8a   :  { %v1284_v56 = vsel %vm46_vm0, %v1282_v45, 0.0  ;;  %v1283_v57 = vadd.f32 %v1374_v53, %v1274_v47 }
 0xb8b   :  { %1285 = vadd.xlane.f32.xlu1 %v1284_v56 }
 0xb8c   :  { %v1287_v58 = vsel %vm46_vm0, %v1283_v57, 0.0 }
 0xb8d   :  { %1288 = vadd.xlane.f32.xlu0 %v1287_v58 }
 0xc18   :  { %v1286_v59 = vpop.xlane.xlu1 %1285 }
 0xc19   :  { %v1291_v48 = vmul.f32 0.03125, %v1286_v59 }
 0xc1a   :  { %v1289_v60 = vpop.xlane.xlu0 %1288 }
 0xc1b   :  { %v1293_v61 = vsub.f32 %v1282_v45, %v1291_v48  ;;  %v1292_v39 = vmul.f32 0.03125, %v1289_v60 }
 0xc1d   :  { %v1294_v62 = vsub.f32 %v1283_v57, %v1292_v39  ;;  %v1295_v63 = vmul.f32 %v1293_v61, %v1293_v61 }
 0xc1f   :  { %v1297_v4 = vsel %vm46_vm0, %v1295_v63, 0.0  ;;  %v1296_v25 = vmul.f32 %v1294_v62, %v1294_v62 }
 0xc20   :  { %1298 = vadd.xlane.f32.xlu0 %v1297_v4 }
 0xc21   :  { %v1300_v5 = vsel %vm46_vm0, %v1296_v25, 0.0 }
 0xc24   :  { %1301 = vadd.xlane.f32.xlu0 %v1300_v5 }
 0xcad   :  { %v1299_v31 = vpop.xlane.xlu0 %1298 }
 0xcae   :  { %v1303_v33 = vmul.f32 0.03125, %v1299_v31 }
 0xcb0   :  { %v1305_v1 = vadd.f32 1e-05, %v1303_v33 }
 0xcb1   :  { %v1302_v20 = vpop.xlane.xlu0 %1301 }
 0xcb2   :  { %1618 = vrsqrt.f32 %v1305_v1  ;;  %v1304_v24 = vmul.f32 0.03125, %v1302_v20 }
 0xcb4   :  { %v1306_v2 = vadd.f32 1e-05, %v1304_v24 }
 0xcb6   :  { %1620 = vrsqrt.f32 %v1306_v2 }
 0xcbc   :  { %v1619_v34 = vpop.eup %1618 }
 0xcbd   :  { %v1309_v6 = vmul.f32 %v1619_v34, %v1293_v61 }
 0xcbf   :  { %v1318_v7 = vmul.f32 %v1375_v3, %v1309_v6 }
 0xcc0   :  { %v1621_v8 = vpop.eup %1620 }
 0xcc1   :  { %v1327_v9 = vadd.f32 %v1376_v38, %v1318_v7  ;;  %v1310_v10 = vmul.f32 %v1621_v8, %v1294_v62 }
 0xcc3   :  { %1329 = vst.msk [vmem:[%s2007_s12] sm:$0xff] %vm46_vm0, %v1327_v9  ;;  %v1319_v11 = vmul.f32 %v1375_v3, %v1310_v10 }
 0xcc5   :  { %v1328_v12 = vadd.f32 %v1376_v38, %v1319_v11 }
 0xcc7   :  { %1330 = vst.msk [vmem:[%s2007_s12 + $0x8] sm:$0xff] %vm46_vm0, %v1328_v12 }

</bundles_post_ra>
